<compile_context>
chip_gen: v6e
topology: v6e:2x2x1
jax: 0.10.0
libtpu: 0.0.40
codegen_flags: <defaults>
</compile_context>

<pallas_src>
import functools

import jax
import jax.numpy as jnp
from jax.experimental import pallas as pl
from jax.experimental.pallas import tpu as pltpu


def _round_up(x, m):
    return (x + m - 1) // m * m


def _row_tile(ho, cap=16):
    """Largest divisor of ho that is <= cap (whole output rows per grid step)."""
    for d in range(min(ho, cap), 0, -1):
        if ho % d == 0:
            return d
    return 1


# ---------------------------------------------------------------------------
# Kernel 1: fused im2col conv-as-GEMM (bf16 ops, f32 acc) + per-channel batch
# statistics (sum, sum_sq) accumulated across both ("arbitrary") grid axes.
# ---------------------------------------------------------------------------
def conv_stats_kernel(p_ref, w_ref, y_ref, sum_ref, sq_ref, *, tho, wo):
    b = pl.program_id(0)
    h = pl.program_id(1)

    @pl.when((b == 0) & (h == 0))
    def _():
        sum_ref[...] = jnp.zeros_like(sum_ref)
        sq_ref[...] = jnp.zeros_like(sq_ref)

    # 2x2 tap weights, each (4*Cin, Cout_pad) bf16; the weight block index is
    # constant so it is DMA'd once and stays resident in VMEM.
    w00 = w_ref[0, 0]
    w01 = w_ref[0, 1]
    w10 = w_ref[1, 0]
    w11 = w_ref[1, 1]

    row_base = h * tho
    if tho > 1 and (tho & (tho - 1)) == 0:
        row_base = pl.multiple_of(row_base, tho)

    csum = jnp.zeros(sum_ref.shape, jnp.float32)
    csq = jnp.zeros(sq_ref.shape, jnp.float32)
    for r in range(tho):                                  # static unrolled rows
        rows = p_ref[pl.ds(row_base + r, 2), :, :]        # (2, Wo+1, 4*Cin) bf16
        p00 = rows[0, 0:wo, :]
        p01 = rows[0, 1:wo + 1, :]
        p10 = rows[1, 0:wo, :]
        p11 = rows[1, 1:wo + 1, :]
        y_row = (jnp.dot(p00, w00, preferred_element_type=jnp.float32)
                 + jnp.dot(p01, w01, preferred_element_type=jnp.float32)
                 + jnp.dot(p10, w10, preferred_element_type=jnp.float32)
                 + jnp.dot(p11, w11, preferred_element_type=jnp.float32))
        # Stats from the f32 accumulation (before the bf16 cast/store).
        csum = csum + jnp.sum(y_row, axis=0, keepdims=True)
        csq = csq + jnp.sum(y_row * y_row, axis=0, keepdims=True)
        y_ref[r] = y_row.astype(y_ref.dtype)              # bf16 y store
    sum_ref[...] += csum
    sq_ref[...] += csq


# ---------------------------------------------------------------------------
# Kernel 2: fused BatchNorm (precomputed scale/shift) + LeakyReLU(0.2).
# Reads bf16 y, applies the affine in f32, writes f32.  Pure HBM-roofline.
# ---------------------------------------------------------------------------
def bn_lrelu_kernel(y_ref, scale_ref, shift_ref, o_ref, *, slope):
    z = y_ref[...].astype(jnp.float32) * scale_ref[...] + shift_ref[...]
    o_ref[...] = jnp.where(z >= 0, z, slope * z)


# ---------------------------------------------------------------------------
# Glue: spectral norm (1 power iteration per forward, like PyTorch).
# ---------------------------------------------------------------------------
def spectral_normalize(w, key, n_iter=1, eps=1e-12):
    cout = w.shape[0]
    w_mat = w.reshape(cout, -1)
    u = jax.random.normal(key, (cout,), dtype=w.dtype)
    u = u / jnp.maximum(jnp.linalg.norm(u), eps)
    v = None
    for _ in range(n_iter):
        v = w_mat.T @ u
        v = v / jnp.maximum(jnp.linalg.norm(v), eps)
        u = w_mat @ v
        u = u / jnp.maximum(jnp.linalg.norm(u), eps)
    sigma = u @ (w_mat @ v)
    return w / sigma


# ---------------------------------------------------------------------------
# DownBlock forward (NCHW in, NCHW out).
# ---------------------------------------------------------------------------
def down_block_forward(x_nchw, w_conv, gamma, beta, sn_key, eps=1e-5, slope=0.2):
    n, cin, h, w = x_nchw.shape
    cout = w_conv.shape[0]
    assert h % 2 == 0 and w % 2 == 0, "DownBlock expects even spatial dims"

    ho, wo = h // 2, w // 2
    hq, wq = ho + 1, wo + 1
    k4 = 4 * cin
    cout_pad = _round_up(cout, 128)           # lane-dense stores / MXU N dim

    # ---- host-side prep: cheap relayouts (~1x input traffic, no duplication) --
    # NCHW -> NHWC, bf16, pad=1, then space-to-depth by the stride (2):
    #   P[n, qh, qw, (a, b, c)] = xpad[n, 2*qh + a, 2*qw + b, c]
    x_nhwc = jnp.transpose(x_nchw, (0, 2, 3, 1)).astype(jnp.bfloat16)
    xp = jnp.pad(x_nhwc, ((0, 0), (1, 1), (1, 1), (0, 0)))
    p = xp.reshape(n, hq, 2, wq, 2, cin)
    p = jnp.transpose(p, (0, 1, 3, 2, 4, 5)).reshape(n, hq, wq, k4)

    # Spectral norm (1 power iteration) + 2x2 tap weight matrices:
    #   W_tap[dh, dw, (a, b, c), co] = w_sn[co, c, 2*dh + a, 2*dw + b]
    w_sn = spectral_normalize(w_conv, sn_key)               # (Cout, Cin, 4, 4) f32
    w_t = jnp.transpose(w_sn, (2, 3, 1, 0))                 # (4, 4, Cin, Cout)
    w_t = w_t.reshape(2, 2, 2, 2, cin, cout)                # (dh, a, dw, b, c, co)
    w_t = jnp.transpose(w_t, (0, 2, 1, 3, 4, 5))            # (dh, dw, a, b, c, co)
    w_taps = w_t.reshape(2, 2, k4, cout).astype(jnp.bfloat16)
    w_taps = jnp.pad(w_taps, ((0, 0), (0, 0), (0, 0), (0, cout_pad - cout)))

    tho = _row_tile(ho)                                     # output rows per step
    n_hblk = ho // tho

    # Scoped-VMEM budget (v5e defaults to only 16 MiB of its 128 MiB physical).
    need = 2 * (hq * wq * k4 * 2 + 4 * k4 * cout_pad * 2
                + tho * wo * cout_pad * (2 + 4)) + (1 << 20)
    vmem_limit = int(min(96 * 1024 * 1024, max(32 * 1024 * 1024, 2 * need)))

    # --- Pallas call 1: fused im2col GEMM + batch stats ---
    y, s_sum, s_sq = pl.pallas_call(
        functools.partial(conv_stats_kernel, tho=tho, wo=wo),
        out_shape=(jax.ShapeDtypeStruct((n, ho, wo, cout_pad), jnp.bfloat16),
                   jax.ShapeDtypeStruct((1, cout_pad), jnp.float32),
                   jax.ShapeDtypeStruct((1, cout_pad), jnp.float32)),
        grid_spec=pltpu.PrefetchScalarGridSpec(
            num_scalar_prefetch=0,
            grid=(n, n_hblk),
            in_specs=[
                # Whole padded phase image of one batch element.  The block
                # index depends only on b, so it is DMA'd once per image and
                # reused across that image's row blocks.
                pl.BlockSpec((None, hq, wq, k4), lambda b, hb: (b, 0, 0, 0)),
                pl.BlockSpec((2, 2, k4, cout_pad), lambda b, hb: (0, 0, 0, 0)),
            ],
            out_specs=[
                pl.BlockSpec((None, tho, wo, cout_pad),
                             lambda b, hb: (b, hb, 0, 0)),
                pl.BlockSpec((1, cout_pad), lambda b, hb: (0, 0)),
                pl.BlockSpec((1, cout_pad), lambda b, hb: (0, 0)),
            ],
        ),
        compiler_params=pltpu.CompilerParams(
            dimension_semantics=("arbitrary", "arbitrary"),
            vmem_limit_bytes=vmem_limit),
    )(p, w_taps)

    # Fused BN scale/shift: tiny (Cout,)-sized op done once (not per tile).
    # Padded channels carry exact zeros; the divisor is the true element count.
    m_count = float(n * ho * wo)
    mean = s_sum / m_count
    var = jnp.maximum(s_sq / m_count - mean * mean, 0.0)    # biased, like BN train
    inv = jax.lax.rsqrt(var + eps)
    gamma_p = jnp.pad(gamma.astype(jnp.float32), (0, cout_pad - cout),
                      constant_values=1.0).reshape(1, cout_pad)
    beta_p = jnp.pad(beta.astype(jnp.float32),
                     (0, cout_pad - cout)).reshape(1, cout_pad)
    scale = gamma_p * inv
    shift = beta_p - mean * scale

    # --- Pallas call 2: z = y*scale + shift; LeakyReLU(0.2) ---
    out = pl.pallas_call(
        functools.partial(bn_lrelu_kernel, slope=slope),
        out_shape=jax.ShapeDtypeStruct((n, ho, wo, cout_pad), jnp.float32),
        grid_spec=pltpu.PrefetchScalarGridSpec(
            num_scalar_prefetch=0,
            grid=(n, n_hblk),
            in_specs=[pl.BlockSpec((None, tho, wo, cout_pad),
                                   lambda b, hb: (b, hb, 0, 0)),
                      pl.BlockSpec((1, cout_pad), lambda b, hb: (0, 0)),
                      pl.BlockSpec((1, cout_pad), lambda b, hb: (0, 0))],
            out_specs=pl.BlockSpec((None, tho, wo, cout_pad),
                                   lambda b, hb: (b, hb, 0, 0)),
        ),
        compiler_params=pltpu.CompilerParams(
            dimension_semantics=("parallel", "parallel"),
            vmem_limit_bytes=vmem_limit),
    )(y, scale, shift)

    # TODO(synk): keep NHWC for the consumer to drop this crop+transpose pass.
    out = out[:, :, :, :cout]
    return jnp.transpose(out, (0, 3, 1, 2))                 # NHWC -> NCHW


# ---------------------------------------------------------------------------
# Pure-JAX reference (lax conv) for correctness.  operand_dtype lets us compare
# against both the exact-f32 module and a bf16-operand conv (what the MXU sees,
# still with f32 accumulation).
# ---------------------------------------------------------------------------
def reference(x_nchw, w_conv, gamma, beta, sn_key, eps=1e-5, slope=0.2,
              operand_dtype=jnp.float32):
    w_sn = spectral_normalize(w_conv, sn_key)
    y = jax.lax.conv_general_dilated(
        x_nchw.astype(operand_dtype), w_sn.astype(operand_dtype),
        window_strides=(2, 2), padding=((1, 1), (1, 1)),
        dimension_numbers=("NCHW", "OIHW", "NCHW"),
        preferred_element_type=jnp.float32)
    mean = y.mean(axis=(0, 2, 3), keepdims=True)
    var = y.var(axis=(0, 2, 3), keepdims=True)              # biased, like BN
    yhat = (y - mean) / jnp.sqrt(var + eps)
    z = yhat * gamma.reshape(1, -1, 1, 1) + beta.reshape(1, -1, 1, 1)
    return jnp.where(z >= 0, z, slope * z)


if __name__ == "__main__":
    key = jax.random.PRNGKey(0)
    k_x, k_w, k_u = jax.random.split(key, 3)

    in_planes, out_planes = 4, 8
    N, H, W = 2, 16, 16

    x = jax.random.normal(k_x, (N, in_planes, H, W), dtype=jnp.float32)
    w_conv = 0.1 * jax.random.normal(
        k_w, (out_planes, in_planes, 4, 4), dtype=jnp.float32)
    gamma = jnp.ones((out_planes,), dtype=jnp.float32)       # BN affine defaults
    beta = jnp.zeros((out_planes,), dtype=jnp.float32)

    fwd = jax.jit(down_block_forward)
    out = jax.block_until_ready(fwd(x, w_conv, gamma, beta, k_u))
    assert out.shape == (N, out_planes, H // 2, W // 2), out.shape

    # Check vs a reference fed the same bf16 operands the MXU sees (f32 acc in
    # both); tolerance also covers the bf16 y intermediate before BN.
    ref_bf16 = reference(x, w_conv, gamma, beta, k_u, operand_dtype=jnp.bfloat16)
    err_bf16 = float(jnp.max(jnp.abs(out - ref_bf16)))
    assert jnp.allclose(out, ref_bf16, atol=3e-2, rtol=3e-2), err_bf16

    # Looser sanity check vs the exact f32 PyTorch-semantics reference
    # (difference is only bf16 rounding of the GEMM operands and of y).
    ref_f32 = reference(x, w_conv, gamma, beta, k_u, operand_dtype=jnp.float32)
    err_f32 = float(jnp.max(jnp.abs(out - ref_f32)))
    assert jnp.allclose(out, ref_f32, atol=6e-2, rtol=6e-2), err_f32

    print("KERNEL_OK")
</pallas_src>

<mosaic_0001>
module attributes {stable_mosaic.version = 11 : i64} {
  func.func @conv_stats_kernel(%arg0: i32, %arg1: i32, %arg2: memref<1x9x9x16xbf16, #tpu.memory_space<vmem>>, %arg3: memref<2x2x16x128xbf16, #tpu.memory_space<vmem>>, %arg4: memref<1x8x8x128xbf16, #tpu.memory_space<vmem>>, %arg5: memref<1x128xf32, #tpu.memory_space<vmem>>, %arg6: memref<1x128xf32, #tpu.memory_space<vmem>>) attributes {dimension_semantics = [#tpu.dimension_semantics<arbitrary>, #tpu.dimension_semantics<arbitrary>], iteration_bounds = array<i64: 2, 1>, scalar_prefetch = 0 : i64, scratch_operands = 0 : i64, tpu.core_type = #tpu.core_type<tc>, window_params = [{transform_indices = @transform_0, window_bounds = array<i64: 1, 9, 9, 16>}, {pipeline_mode = #tpu.pipeline_mode<synchronous>, transform_indices = @transform_1, window_bounds = array<i64: 2, 2, 16, 128>}, {transform_indices = @transform_2, window_bounds = array<i64: 1, 8, 8, 128>}, {pipeline_mode = #tpu.pipeline_mode<synchronous>, transform_indices = @transform_3, window_bounds = array<i64: 1, 128>}, {pipeline_mode = #tpu.pipeline_mode<synchronous>, transform_indices = @transform_4, window_bounds = array<i64: 1, 128>}]} {
    %c0_i32 = arith.constant 0 : i32
    %0 = arith.cmpi eq, %arg0, %c0_i32 : i32
    %c0_i32_0 = arith.constant 0 : i32
    %1 = arith.cmpi eq, %arg1, %c0_i32_0 : i32
    %2 = arith.andi %0, %1 : i1
    %3 = arith.extui %2 : i1 to i32
    %c0_i32_1 = arith.constant 0 : i32
    %4 = arith.cmpi ne, %3, %c0_i32_1 : i32
    scf.if %4 {
      %cst_124 = arith.constant 0.000000e+00 : f32
      %263 = vector.broadcast %cst_124 : f32 to vector<1x128xf32>
      %c0_125 = arith.constant 0 : index
      %c0_126 = arith.constant 0 : index
      %264 = vector.load %arg5[%c0_125, %c0_126] : memref<1x128xf32, #tpu.memory_space<vmem>>, vector<1x128xf32>
      tpu.vector_store %arg5[%c0_125, %c0_126], %263 {strides = array<i32>} : memref<1x128xf32, #tpu.memory_space<vmem>>, vector<1x128xf32>,
      %cst_127 = arith.constant 0.000000e+00 : f32
      %265 = vector.broadcast %cst_127 : f32 to vector<1x128xf32>
      %c0_128 = arith.constant 0 : index
      %c0_129 = arith.constant 0 : index
      %266 = vector.load %arg6[%c0_128, %c0_129] : memref<1x128xf32, #tpu.memory_space<vmem>>, vector<1x128xf32>
      tpu.vector_store %arg6[%c0_128, %c0_129], %265 {strides = array<i32>} : memref<1x128xf32, #tpu.memory_space<vmem>>, vector<1x128xf32>,
    } else {
    }
    %c0 = arith.constant 0 : index
    %c0_2 = arith.constant 0 : index
    %c0_3 = arith.constant 0 : index
    %c0_4 = arith.constant 0 : index
    %5 = vector.load %arg3[%c0, %c0_2, %c0_3, %c0_4] : memref<2x2x16x128xbf16, #tpu.memory_space<vmem>>, vector<1x1x16x128xbf16>
    %6 = vector.shape_cast %5 : vector<1x1x16x128xbf16> to vector<16x128xbf16>
    %c0_5 = arith.constant 0 : index
    %c1 = arith.constant 1 : index
    %c0_6 = arith.constant 0 : index
    %c0_7 = arith.constant 0 : index
    %7 = vector.load %arg3[%c0_5, %c1, %c0_6, %c0_7] : memref<2x2x16x128xbf16, #tpu.memory_space<vmem>>, vector<1x1x16x128xbf16>
    %8 = vector.shape_cast %7 : vector<1x1x16x128xbf16> to vector<16x128xbf16>
    %c1_8 = arith.constant 1 : index
    %c0_9 = arith.constant 0 : index
    %c0_10 = arith.constant 0 : index
    %c0_11 = arith.constant 0 : index
    %9 = vector.load %arg3[%c1_8, %c0_9, %c0_10, %c0_11] : memref<2x2x16x128xbf16, #tpu.memory_space<vmem>>, vector<1x1x16x128xbf16>
    %10 = vector.shape_cast %9 : vector<1x1x16x128xbf16> to vector<16x128xbf16>
    %c1_12 = arith.constant 1 : index
    %c1_13 = arith.constant 1 : index
    %c0_14 = arith.constant 0 : index
    %c0_15 = arith.constant 0 : index
    %11 = vector.load %arg3[%c1_12, %c1_13, %c0_14, %c0_15] : memref<2x2x16x128xbf16, #tpu.memory_space<vmem>>, vector<1x1x16x128xbf16>
    %12 = vector.shape_cast %11 : vector<1x1x16x128xbf16> to vector<16x128xbf16>
    %c8_i32 = arith.constant 8 : i32
    %13 = arith.muli %arg1, %c8_i32 : i32
    %14 = tpu.assume_multiple %13, 8 : i32
    %cst = arith.constant 0.000000e+00 : f32
    %15 = vector.broadcast %cst : f32 to vector<1x128xf32>
    %cst_16 = arith.constant 0.000000e+00 : f32
    %16 = vector.broadcast %cst_16 : f32 to vector<1x128xf32>
    %c0_i32_17 = arith.constant 0 : i32
    %17 = arith.addi %14, %c0_i32_17 : i32
    %c0_18 = arith.constant 0 : index
    %18 = arith.index_cast %17 : i32 to index
    %c0_19 = arith.constant 0 : index
    %c0_20 = arith.constant 0 : index
    %19 = vector.load %arg2[%c0_18, %18, %c0_19, %c0_20] : memref<1x9x9x16xbf16, #tpu.memory_space<vmem>>, vector<1x2x9x16xbf16>
    %20 = vector.shape_cast %19 : vector<1x2x9x16xbf16> to vector<2x9x16xbf16>
    %21 = vector.extract_strided_slice %20 {offsets = [0, 0, 0], sizes = [1, 8, 16], strides = [1, 1, 1]} : vector<2x9x16xbf16> to vector<1x8x16xbf16>
    %22 = vector.shape_cast %21 : vector<1x8x16xbf16> to vector<8x16xbf16>
    %23 = vector.extract_strided_slice %20 {offsets = [0, 1, 0], sizes = [1, 8, 16], strides = [1, 1, 1]} : vector<2x9x16xbf16> to vector<1x8x16xbf16>
    %24 = vector.shape_cast %23 : vector<1x8x16xbf16> to vector<8x16xbf16>
    %25 = vector.extract_strided_slice %20 {offsets = [1, 0, 0], sizes = [1, 8, 16], strides = [1, 1, 1]} : vector<2x9x16xbf16> to vector<1x8x16xbf16>
    %26 = vector.shape_cast %25 : vector<1x8x16xbf16> to vector<8x16xbf16>
    %27 = vector.extract_strided_slice %20 {offsets = [1, 1, 0], sizes = [1, 8, 16], strides = [1, 1, 1]} : vector<2x9x16xbf16> to vector<1x8x16xbf16>
    %28 = vector.shape_cast %27 : vector<1x8x16xbf16> to vector<8x16xbf16>
    %cst_21 = arith.constant dense<0.000000e+00> : vector<8x128xf32>
    %29 = tpu.matmul %22, %6, %cst_21 {dimension_numbers = #tpu.dot_dimension_numbers<[1], [0], [0], [1], [0, 0, 1, 1], [], []>} : vector<8x16xbf16>, vector<16x128xbf16>, vector<8x128xf32> -> vector<8x128xf32>
    %cst_22 = arith.constant dense<0.000000e+00> : vector<8x128xf32>
    %30 = tpu.matmul %24, %8, %cst_22 {dimension_numbers = #tpu.dot_dimension_numbers<[1], [0], [0], [1], [0, 0, 1, 1], [], []>} : vector<8x16xbf16>, vector<16x128xbf16>, vector<8x128xf32> -> vector<8x128xf32>
    %31 = arith.addf %29, %30 : vector<8x128xf32>
    %cst_23 = arith.constant dense<0.000000e+00> : vector<8x128xf32>
    %32 = tpu.matmul %26, %10, %cst_23 {dimension_numbers = #tpu.dot_dimension_numbers<[1], [0], [0], [1], [0, 0, 1, 1], [], []>} : vector<8x16xbf16>, vector<16x128xbf16>, vector<8x128xf32> -> vector<8x128xf32>
    %33 = arith.addf %31, %32 : vector<8x128xf32>
    %cst_24 = arith.constant dense<0.000000e+00> : vector<8x128xf32>
    %34 = tpu.matmul %28, %12, %cst_24 {dimension_numbers = #tpu.dot_dimension_numbers<[1], [0], [0], [1], [0, 0, 1, 1], [], []>} : vector<8x16xbf16>, vector<16x128xbf16>, vector<8x128xf32> -> vector<8x128xf32>
    %35 = arith.addf %33, %34 : vector<8x128xf32>
    %cst_25 = arith.constant dense<0.000000e+00> : vector<128xf32>
    %36 = vector.multi_reduction <add>, %35, %cst_25 [0] : vector<8x128xf32> to vector<128xf32>
    %37 = vector.shape_cast %36 : vector<128xf32> to vector<1x128xf32>
    %38 = arith.addf %15, %37 : vector<1x128xf32>
    %39 = arith.mulf %35, %35 : vector<8x128xf32>
    %cst_26 = arith.constant dense<0.000000e+00> : vector<128xf32>
    %40 = vector.multi_reduction <add>, %39, %cst_26 [0] : vector<8x128xf32> to vector<128xf32>
    %41 = vector.shape_cast %40 : vector<128xf32> to vector<1x128xf32>
    %42 = arith.addf %16, %41 : vector<1x128xf32>
    %43 = arith.truncf %35 : vector<8x128xf32> to vector<8x128xbf16>
    %c0_27 = arith.constant 0 : index
    %c0_28 = arith.constant 0 : index
    %c0_29 = arith.constant 0 : index
    %c0_30 = arith.constant 0 : index
    %44 = vector.load %arg4[%c0_27, %c0_28, %c0_29, %c0_30] : memref<1x8x8x128xbf16, #tpu.memory_space<vmem>>, vector<1x1x8x128xbf16>
    %45 = vector.shape_cast %44 : vector<1x1x8x128xbf16> to vector<8x128xbf16>
    %46 = vector.shape_cast %43 : vector<8x128xbf16> to vector<1x1x8x128xbf16>
    tpu.vector_store %arg4[%c0_27, %c0_28, %c0_29, %c0_30], %46 {strides = array<i32>} : memref<1x8x8x128xbf16, #tpu.memory_space<vmem>>, vector<1x1x8x128xbf16>,
    %c1_i32 = arith.constant 1 : i32
    %47 = arith.addi %14, %c1_i32 : i32
    %c0_31 = arith.constant 0 : index
    %48 = arith.index_cast %47 : i32 to index
    %c0_32 = arith.constant 0 : index
    %c0_33 = arith.constant 0 : index
    %49 = vector.load %arg2[%c0_31, %48, %c0_32, %c0_33] : memref<1x9x9x16xbf16, #tpu.memory_space<vmem>>, vector<1x2x9x16xbf16>
    %50 = vector.shape_cast %49 : vector<1x2x9x16xbf16> to vector<2x9x16xbf16>
    %51 = vector.extract_strided_slice %50 {offsets = [0, 0, 0], sizes = [1, 8, 16], strides = [1, 1, 1]} : vector<2x9x16xbf16> to vector<1x8x16xbf16>
    %52 = vector.shape_cast %51 : vector<1x8x16xbf16> to vector<8x16xbf16>
    %53 = vector.extract_strided_slice %50 {offsets = [0, 1, 0], sizes = [1, 8, 16], strides = [1, 1, 1]} : vector<2x9x16xbf16> to vector<1x8x16xbf16>
    %54 = vector.shape_cast %53 : vector<1x8x16xbf16> to vector<8x16xbf16>
    %55 = vector.extract_strided_slice %50 {offsets = [1, 0, 0], sizes = [1, 8, 16], strides = [1, 1, 1]} : vector<2x9x16xbf16> to vector<1x8x16xbf16>
    %56 = vector.shape_cast %55 : vector<1x8x16xbf16> to vector<8x16xbf16>
    %57 = vector.extract_strided_slice %50 {offsets = [1, 1, 0], sizes = [1, 8, 16], strides = [1, 1, 1]} : vector<2x9x16xbf16> to vector<1x8x16xbf16>
    %58 = vector.shape_cast %57 : vector<1x8x16xbf16> to vector<8x16xbf16>
    %cst_34 = arith.constant dense<0.000000e+00> : vector<8x128xf32>
    %59 = tpu.matmul %52, %6, %cst_34 {dimension_numbers = #tpu.dot_dimension_numbers<[1], [0], [0], [1], [0, 0, 1, 1], [], []>} : vector<8x16xbf16>, vector<16x128xbf16>, vector<8x128xf32> -> vector<8x128xf32>
    %cst_35 = arith.constant dense<0.000000e+00> : vector<8x128xf32>
    %60 = tpu.matmul %54, %8, %cst_35 {dimension_numbers = #tpu.dot_dimension_numbers<[1], [0], [0], [1], [0, 0, 1, 1], [], []>} : vector<8x16xbf16>, vector<16x128xbf16>, vector<8x128xf32> -> vector<8x128xf32>
    %61 = arith.addf %59, %60 : vector<8x128xf32>
    %cst_36 = arith.constant dense<0.000000e+00> : vector<8x128xf32>
    %62 = tpu.matmul %56, %10, %cst_36 {dimension_numbers = #tpu.dot_dimension_numbers<[1], [0], [0], [1], [0, 0, 1, 1], [], []>} : vector<8x16xbf16>, vector<16x128xbf16>, vector<8x128xf32> -> vector<8x128xf32>
    %63 = arith.addf %61, %62 : vector<8x128xf32>
    %cst_37 = arith.constant dense<0.000000e+00> : vector<8x128xf32>
    %64 = tpu.matmul %58, %12, %cst_37 {dimension_numbers = #tpu.dot_dimension_numbers<[1], [0], [0], [1], [0, 0, 1, 1], [], []>} : vector<8x16xbf16>, vector<16x128xbf16>, vector<8x128xf32> -> vector<8x128xf32>
    %65 = arith.addf %63, %64 : vector<8x128xf32>
    %cst_38 = arith.constant dense<0.000000e+00> : vector<128xf32>
    %66 = vector.multi_reduction <add>, %65, %cst_38 [0] : vector<8x128xf32> to vector<128xf32>
    %67 = vector.shape_cast %66 : vector<128xf32> to vector<1x128xf32>
    %68 = arith.addf %38, %67 : vector<1x128xf32>
    %69 = arith.mulf %65, %65 : vector<8x128xf32>
    %cst_39 = arith.constant dense<0.000000e+00> : vector<128xf32>
    %70 = vector.multi_reduction <add>, %69, %cst_39 [0] : vector<8x128xf32> to vector<128xf32>
    %71 = vector.shape_cast %70 : vector<128xf32> to vector<1x128xf32>
    %72 = arith.addf %42, %71 : vector<1x128xf32>
    %73 = arith.truncf %65 : vector<8x128xf32> to vector<8x128xbf16>
    %c0_40 = arith.constant 0 : index
    %c1_41 = arith.constant 1 : index
    %c0_42 = arith.constant 0 : index
    %c0_43 = arith.constant 0 : index
    %74 = vector.load %arg4[%c0_40, %c1_41, %c0_42, %c0_43] : memref<1x8x8x128xbf16, #tpu.memory_space<vmem>>, vector<1x1x8x128xbf16>
    %75 = vector.shape_cast %74 : vector<1x1x8x128xbf16> to vector<8x128xbf16>
    %76 = vector.shape_cast %73 : vector<8x128xbf16> to vector<1x1x8x128xbf16>
    tpu.vector_store %arg4[%c0_40, %c1_41, %c0_42, %c0_43], %76 {strides = array<i32>} : memref<1x8x8x128xbf16, #tpu.memory_space<vmem>>, vector<1x1x8x128xbf16>,
    %c2_i32 = arith.constant 2 : i32
    %77 = arith.addi %14, %c2_i32 : i32
    %c0_44 = arith.constant 0 : index
    %78 = arith.index_cast %77 : i32 to index
    %c0_45 = arith.constant 0 : index
    %c0_46 = arith.constant 0 : index
    %79 = vector.load %arg2[%c0_44, %78, %c0_45, %c0_46] : memref<1x9x9x16xbf16, #tpu.memory_space<vmem>>, vector<1x2x9x16xbf16>
    %80 = vector.shape_cast %79 : vector<1x2x9x16xbf16> to vector<2x9x16xbf16>
    %81 = vector.extract_strided_slice %80 {offsets = [0, 0, 0], sizes = [1, 8, 16], strides = [1, 1, 1]} : vector<2x9x16xbf16> to vector<1x8x16xbf16>
    %82 = vector.shape_cast %81 : vector<1x8x16xbf16> to vector<8x16xbf16>
    %83 = vector.extract_strided_slice %80 {offsets = [0, 1, 0], sizes = [1, 8, 16], strides = [1, 1, 1]} : vector<2x9x16xbf16> to vector<1x8x16xbf16>
    %84 = vector.shape_cast %83 : vector<1x8x16xbf16> to vector<8x16xbf16>
    %85 = vector.extract_strided_slice %80 {offsets = [1, 0, 0], sizes = [1, 8, 16], strides = [1, 1, 1]} : vector<2x9x16xbf16> to vector<1x8x16xbf16>
    %86 = vector.shape_cast %85 : vector<1x8x16xbf16> to vector<8x16xbf16>
    %87 = vector.extract_strided_slice %80 {offsets = [1, 1, 0], sizes = [1, 8, 16], strides = [1, 1, 1]} : vector<2x9x16xbf16> to vector<1x8x16xbf16>
    %88 = vector.shape_cast %87 : vector<1x8x16xbf16> to vector<8x16xbf16>
    %cst_47 = arith.constant dense<0.000000e+00> : vector<8x128xf32>
    %89 = tpu.matmul %82, %6, %cst_47 {dimension_numbers = #tpu.dot_dimension_numbers<[1], [0], [0], [1], [0, 0, 1, 1], [], []>} : vector<8x16xbf16>, vector<16x128xbf16>, vector<8x128xf32> -> vector<8x128xf32>
    %cst_48 = arith.constant dense<0.000000e+00> : vector<8x128xf32>
    %90 = tpu.matmul %84, %8, %cst_48 {dimension_numbers = #tpu.dot_dimension_numbers<[1], [0], [0], [1], [0, 0, 1, 1], [], []>} : vector<8x16xbf16>, vector<16x128xbf16>, vector<8x128xf32> -> vector<8x128xf32>
    %91 = arith.addf %89, %90 : vector<8x128xf32>
    %cst_49 = arith.constant dense<0.000000e+00> : vector<8x128xf32>
    %92 = tpu.matmul %86, %10, %cst_49 {dimension_numbers = #tpu.dot_dimension_numbers<[1], [0], [0], [1], [0, 0, 1, 1], [], []>} : vector<8x16xbf16>, vector<16x128xbf16>, vector<8x128xf32> -> vector<8x128xf32>
    %93 = arith.addf %91, %92 : vector<8x128xf32>
    %cst_50 = arith.constant dense<0.000000e+00> : vector<8x128xf32>
    %94 = tpu.matmul %88, %12, %cst_50 {dimension_numbers = #tpu.dot_dimension_numbers<[1], [0], [0], [1], [0, 0, 1, 1], [], []>} : vector<8x16xbf16>, vector<16x128xbf16>, vector<8x128xf32> -> vector<8x128xf32>
    %95 = arith.addf %93, %94 : vector<8x128xf32>
    %cst_51 = arith.constant dense<0.000000e+00> : vector<128xf32>
    %96 = vector.multi_reduction <add>, %95, %cst_51 [0] : vector<8x128xf32> to vector<128xf32>
    %97 = vector.shape_cast %96 : vector<128xf32> to vector<1x128xf32>
    %98 = arith.addf %68, %97 : vector<1x128xf32>
    %99 = arith.mulf %95, %95 : vector<8x128xf32>
    %cst_52 = arith.constant dense<0.000000e+00> : vector<128xf32>
    %100 = vector.multi_reduction <add>, %99, %cst_52 [0] : vector<8x128xf32> to vector<128xf32>
    %101 = vector.shape_cast %100 : vector<128xf32> to vector<1x128xf32>
    %102 = arith.addf %72, %101 : vector<1x128xf32>
    %103 = arith.truncf %95 : vector<8x128xf32> to vector<8x128xbf16>
    %c0_53 = arith.constant 0 : index
    %c2 = arith.constant 2 : index
    %c0_54 = arith.constant 0 : index
    %c0_55 = arith.constant 0 : index
    %104 = vector.load %arg4[%c0_53, %c2, %c0_54, %c0_55] : memref<1x8x8x128xbf16, #tpu.memory_space<vmem>>, vector<1x1x8x128xbf16>
    %105 = vector.shape_cast %104 : vector<1x1x8x128xbf16> to vector<8x128xbf16>
    %106 = vector.shape_cast %103 : vector<8x128xbf16> to vector<1x1x8x128xbf16>
    tpu.vector_store %arg4[%c0_53, %c2, %c0_54, %c0_55], %106 {strides = array<i32>} : memref<1x8x8x128xbf16, #tpu.memory_space<vmem>>, vector<1x1x8x128xbf16>,
    %c3_i32 = arith.constant 3 : i32
    %107 = arith.addi %14, %c3_i32 : i32
    %c0_56 = arith.constant 0 : index
    %108 = arith.index_cast %107 : i32 to index
    %c0_57 = arith.constant 0 : index
    %c0_58 = arith.constant 0 : index
    %109 = vector.load %arg2[%c0_56, %108, %c0_57, %c0_58] : memref<1x9x9x16xbf16, #tpu.memory_space<vmem>>, vector<1x2x9x16xbf16>
    %110 = vector.shape_cast %109 : vector<1x2x9x16xbf16> to vector<2x9x16xbf16>
    %111 = vector.extract_strided_slice %110 {offsets = [0, 0, 0], sizes = [1, 8, 16], strides = [1, 1, 1]} : vector<2x9x16xbf16> to vector<1x8x16xbf16>
    %112 = vector.shape_cast %111 : vector<1x8x16xbf16> to vector<8x16xbf16>
    %113 = vector.extract_strided_slice %110 {offsets = [0, 1, 0], sizes = [1, 8, 16], strides = [1, 1, 1]} : vector<2x9x16xbf16> to vector<1x8x16xbf16>
    %114 = vector.shape_cast %113 : vector<1x8x16xbf16> to vector<8x16xbf16>
    %115 = vector.extract_strided_slice %110 {offsets = [1, 0, 0], sizes = [1, 8, 16], strides = [1, 1, 1]} : vector<2x9x16xbf16> to vector<1x8x16xbf16>
    %116 = vector.shape_cast %115 : vector<1x8x16xbf16> to vector<8x16xbf16>
    %117 = vector.extract_strided_slice %110 {offsets = [1, 1, 0], sizes = [1, 8, 16], strides = [1, 1, 1]} : vector<2x9x16xbf16> to vector<1x8x16xbf16>
    %118 = vector.shape_cast %117 : vector<1x8x16xbf16> to vector<8x16xbf16>
    %cst_59 = arith.constant dense<0.000000e+00> : vector<8x128xf32>
    %119 = tpu.matmul %112, %6, %cst_59 {dimension_numbers = #tpu.dot_dimension_numbers<[1], [0], [0], [1], [0, 0, 1, 1], [], []>} : vector<8x16xbf16>, vector<16x128xbf16>, vector<8x128xf32> -> vector<8x128xf32>
    %cst_60 = arith.constant dense<0.000000e+00> : vector<8x128xf32>
    %120 = tpu.matmul %114, %8, %cst_60 {dimension_numbers = #tpu.dot_dimension_numbers<[1], [0], [0], [1], [0, 0, 1, 1], [], []>} : vector<8x16xbf16>, vector<16x128xbf16>, vector<8x128xf32> -> vector<8x128xf32>
    %121 = arith.addf %119, %120 : vector<8x128xf32>
    %cst_61 = arith.constant dense<0.000000e+00> : vector<8x128xf32>
    %122 = tpu.matmul %116, %10, %cst_61 {dimension_numbers = #tpu.dot_dimension_numbers<[1], [0], [0], [1], [0, 0, 1, 1], [], []>} : vector<8x16xbf16>, vector<16x128xbf16>, vector<8x128xf32> -> vector<8x128xf32>
    %123 = arith.addf %121, %122 : vector<8x128xf32>
    %cst_62 = arith.constant dense<0.000000e+00> : vector<8x128xf32>
    %124 = tpu.matmul %118, %12, %cst_62 {dimension_numbers = #tpu.dot_dimension_numbers<[1], [0], [0], [1], [0, 0, 1, 1], [], []>} : vector<8x16xbf16>, vector<16x128xbf16>, vector<8x128xf32> -> vector<8x128xf32>
    %125 = arith.addf %123, %124 : vector<8x128xf32>
    %cst_63 = arith.constant dense<0.000000e+00> : vector<128xf32>
    %126 = vector.multi_reduction <add>, %125, %cst_63 [0] : vector<8x128xf32> to vector<128xf32>
    %127 = vector.shape_cast %126 : vector<128xf32> to vector<1x128xf32>
    %128 = arith.addf %98, %127 : vector<1x128xf32>
    %129 = arith.mulf %125, %125 : vector<8x128xf32>
    %cst_64 = arith.constant dense<0.000000e+00> : vector<128xf32>
    %130 = vector.multi_reduction <add>, %129, %cst_64 [0] : vector<8x128xf32> to vector<128xf32>
    %131 = vector.shape_cast %130 : vector<128xf32> to vector<1x128xf32>
    %132 = arith.addf %102, %131 : vector<1x128xf32>
    %133 = arith.truncf %125 : vector<8x128xf32> to vector<8x128xbf16>
    %c0_65 = arith.constant 0 : index
    %c3 = arith.constant 3 : index
    %c0_66 = arith.constant 0 : index
    %c0_67 = arith.constant 0 : index
    %134 = vector.load %arg4[%c0_65, %c3, %c0_66, %c0_67] : memref<1x8x8x128xbf16, #tpu.memory_space<vmem>>, vector<1x1x8x128xbf16>
    %135 = vector.shape_cast %134 : vector<1x1x8x128xbf16> to vector<8x128xbf16>
    %136 = vector.shape_cast %133 : vector<8x128xbf16> to vector<1x1x8x128xbf16>
    tpu.vector_store %arg4[%c0_65, %c3, %c0_66, %c0_67], %136 {strides = array<i32>} : memref<1x8x8x128xbf16, #tpu.memory_space<vmem>>, vector<1x1x8x128xbf16>,
    %c4_i32 = arith.constant 4 : i32
    %137 = arith.addi %14, %c4_i32 : i32
    %c0_68 = arith.constant 0 : index
    %138 = arith.index_cast %137 : i32 to index
    %c0_69 = arith.constant 0 : index
    %c0_70 = arith.constant 0 : index
    %139 = vector.load %arg2[%c0_68, %138, %c0_69, %c0_70] : memref<1x9x9x16xbf16, #tpu.memory_space<vmem>>, vector<1x2x9x16xbf16>
    %140 = vector.shape_cast %139 : vector<1x2x9x16xbf16> to vector<2x9x16xbf16>
    %141 = vector.extract_strided_slice %140 {offsets = [0, 0, 0], sizes = [1, 8, 16], strides = [1, 1, 1]} : vector<2x9x16xbf16> to vector<1x8x16xbf16>
    %142 = vector.shape_cast %141 : vector<1x8x16xbf16> to vector<8x16xbf16>
    %143 = vector.extract_strided_slice %140 {offsets = [0, 1, 0], sizes = [1, 8, 16], strides = [1, 1, 1]} : vector<2x9x16xbf16> to vector<1x8x16xbf16>
    %144 = vector.shape_cast %143 : vector<1x8x16xbf16> to vector<8x16xbf16>
    %145 = vector.extract_strided_slice %140 {offsets = [1, 0, 0], sizes = [1, 8, 16], strides = [1, 1, 1]} : vector<2x9x16xbf16> to vector<1x8x16xbf16>
    %146 = vector.shape_cast %145 : vector<1x8x16xbf16> to vector<8x16xbf16>
    %147 = vector.extract_strided_slice %140 {offsets = [1, 1, 0], sizes = [1, 8, 16], strides = [1, 1, 1]} : vector<2x9x16xbf16> to vector<1x8x16xbf16>
    %148 = vector.shape_cast %147 : vector<1x8x16xbf16> to vector<8x16xbf16>
    %cst_71 = arith.constant dense<0.000000e+00> : vector<8x128xf32>
    %149 = tpu.matmul %142, %6, %cst_71 {dimension_numbers = #tpu.dot_dimension_numbers<[1], [0], [0], [1], [0, 0, 1, 1], [], []>} : vector<8x16xbf16>, vector<16x128xbf16>, vector<8x128xf32> -> vector<8x128xf32>
    %cst_72 = arith.constant dense<0.000000e+00> : vector<8x128xf32>
    %150 = tpu.matmul %144, %8, %cst_72 {dimension_numbers = #tpu.dot_dimension_numbers<[1], [0], [0], [1], [0, 0, 1, 1], [], []>} : vector<8x16xbf16>, vector<16x128xbf16>, vector<8x128xf32> -> vector<8x128xf32>
    %151 = arith.addf %149, %150 : vector<8x128xf32>
    %cst_73 = arith.constant dense<0.000000e+00> : vector<8x128xf32>
    %152 = tpu.matmul %146, %10, %cst_73 {dimension_numbers = #tpu.dot_dimension_numbers<[1], [0], [0], [1], [0, 0, 1, 1], [], []>} : vector<8x16xbf16>, vector<16x128xbf16>, vector<8x128xf32> -> vector<8x128xf32>
    %153 = arith.addf %151, %152 : vector<8x128xf32>
    %cst_74 = arith.constant dense<0.000000e+00> : vector<8x128xf32>
    %154 = tpu.matmul %148, %12, %cst_74 {dimension_numbers = #tpu.dot_dimension_numbers<[1], [0], [0], [1], [0, 0, 1, 1], [], []>} : vector<8x16xbf16>, vector<16x128xbf16>, vector<8x128xf32> -> vector<8x128xf32>
    %155 = arith.addf %153, %154 : vector<8x128xf32>
    %cst_75 = arith.constant dense<0.000000e+00> : vector<128xf32>
    %156 = vector.multi_reduction <add>, %155, %cst_75 [0] : vector<8x128xf32> to vector<128xf32>
    %157 = vector.shape_cast %156 : vector<128xf32> to vector<1x128xf32>
    %158 = arith.addf %128, %157 : vector<1x128xf32>
    %159 = arith.mulf %155, %155 : vector<8x128xf32>
    %cst_76 = arith.constant dense<0.000000e+00> : vector<128xf32>
    %160 = vector.multi_reduction <add>, %159, %cst_76 [0] : vector<8x128xf32> to vector<128xf32>
    %161 = vector.shape_cast %160 : vector<128xf32> to vector<1x128xf32>
    %162 = arith.addf %132, %161 : vector<1x128xf32>
    %163 = arith.truncf %155 : vector<8x128xf32> to vector<8x128xbf16>
    %c0_77 = arith.constant 0 : index
    %c4 = arith.constant 4 : index
    %c0_78 = arith.constant 0 : index
    %c0_79 = arith.constant 0 : index
    %164 = vector.load %arg4[%c0_77, %c4, %c0_78, %c0_79] : memref<1x8x8x128xbf16, #tpu.memory_space<vmem>>, vector<1x1x8x128xbf16>
    %165 = vector.shape_cast %164 : vector<1x1x8x128xbf16> to vector<8x128xbf16>
    %166 = vector.shape_cast %163 : vector<8x128xbf16> to vector<1x1x8x128xbf16>
    tpu.vector_store %arg4[%c0_77, %c4, %c0_78, %c0_79], %166 {strides = array<i32>} : memref<1x8x8x128xbf16, #tpu.memory_space<vmem>>, vector<1x1x8x128xbf16>,
    %c5_i32 = arith.constant 5 : i32
    %167 = arith.addi %14, %c5_i32 : i32
    %c0_80 = arith.constant 0 : index
    %168 = arith.index_cast %167 : i32 to index
    %c0_81 = arith.constant 0 : index
    %c0_82 = arith.constant 0 : index
    %169 = vector.load %arg2[%c0_80, %168, %c0_81, %c0_82] : memref<1x9x9x16xbf16, #tpu.memory_space<vmem>>, vector<1x2x9x16xbf16>
    %170 = vector.shape_cast %169 : vector<1x2x9x16xbf16> to vector<2x9x16xbf16>
    %171 = vector.extract_strided_slice %170 {offsets = [0, 0, 0], sizes = [1, 8, 16], strides = [1, 1, 1]} : vector<2x9x16xbf16> to vector<1x8x16xbf16>
    %172 = vector.shape_cast %171 : vector<1x8x16xbf16> to vector<8x16xbf16>
    %173 = vector.extract_strided_slice %170 {offsets = [0, 1, 0], sizes = [1, 8, 16], strides = [1, 1, 1]} : vector<2x9x16xbf16> to vector<1x8x16xbf16>
    %174 = vector.shape_cast %173 : vector<1x8x16xbf16> to vector<8x16xbf16>
    %175 = vector.extract_strided_slice %170 {offsets = [1, 0, 0], sizes = [1, 8, 16], strides = [1, 1, 1]} : vector<2x9x16xbf16> to vector<1x8x16xbf16>
    %176 = vector.shape_cast %175 : vector<1x8x16xbf16> to vector<8x16xbf16>
    %177 = vector.extract_strided_slice %170 {offsets = [1, 1, 0], sizes = [1, 8, 16], strides = [1, 1, 1]} : vector<2x9x16xbf16> to vector<1x8x16xbf16>
    %178 = vector.shape_cast %177 : vector<1x8x16xbf16> to vector<8x16xbf16>
    %cst_83 = arith.constant dense<0.000000e+00> : vector<8x128xf32>
    %179 = tpu.matmul %172, %6, %cst_83 {dimension_numbers = #tpu.dot_dimension_numbers<[1], [0], [0], [1], [0, 0, 1, 1], [], []>} : vector<8x16xbf16>, vector<16x128xbf16>, vector<8x128xf32> -> vector<8x128xf32>
    %cst_84 = arith.constant dense<0.000000e+00> : vector<8x128xf32>
    %180 = tpu.matmul %174, %8, %cst_84 {dimension_numbers = #tpu.dot_dimension_numbers<[1], [0], [0], [1], [0, 0, 1, 1], [], []>} : vector<8x16xbf16>, vector<16x128xbf16>, vector<8x128xf32> -> vector<8x128xf32>
    %181 = arith.addf %179, %180 : vector<8x128xf32>
    %cst_85 = arith.constant dense<0.000000e+00> : vector<8x128xf32>
    %182 = tpu.matmul %176, %10, %cst_85 {dimension_numbers = #tpu.dot_dimension_numbers<[1], [0], [0], [1], [0, 0, 1, 1], [], []>} : vector<8x16xbf16>, vector<16x128xbf16>, vector<8x128xf32> -> vector<8x128xf32>
    %183 = arith.addf %181, %182 : vector<8x128xf32>
    %cst_86 = arith.constant dense<0.000000e+00> : vector<8x128xf32>
    %184 = tpu.matmul %178, %12, %cst_86 {dimension_numbers = #tpu.dot_dimension_numbers<[1], [0], [0], [1], [0, 0, 1, 1], [], []>} : vector<8x16xbf16>, vector<16x128xbf16>, vector<8x128xf32> -> vector<8x128xf32>
    %185 = arith.addf %183, %184 : vector<8x128xf32>
    %cst_87 = arith.constant dense<0.000000e+00> : vector<128xf32>
    %186 = vector.multi_reduction <add>, %185, %cst_87 [0] : vector<8x128xf32> to vector<128xf32>
    %187 = vector.shape_cast %186 : vector<128xf32> to vector<1x128xf32>
    %188 = arith.addf %158, %187 : vector<1x128xf32>
    %189 = arith.mulf %185, %185 : vector<8x128xf32>
    %cst_88 = arith.constant dense<0.000000e+00> : vector<128xf32>
    %190 = vector.multi_reduction <add>, %189, %cst_88 [0] : vector<8x128xf32> to vector<128xf32>
    %191 = vector.shape_cast %190 : vector<128xf32> to vector<1x128xf32>
    %192 = arith.addf %162, %191 : vector<1x128xf32>
    %193 = arith.truncf %185 : vector<8x128xf32> to vector<8x128xbf16>
    %c0_89 = arith.constant 0 : index
    %c5 = arith.constant 5 : index
    %c0_90 = arith.constant 0 : index
    %c0_91 = arith.constant 0 : index
    %194 = vector.load %arg4[%c0_89, %c5, %c0_90, %c0_91] : memref<1x8x8x128xbf16, #tpu.memory_space<vmem>>, vector<1x1x8x128xbf16>
    %195 = vector.shape_cast %194 : vector<1x1x8x128xbf16> to vector<8x128xbf16>
    %196 = vector.shape_cast %193 : vector<8x128xbf16> to vector<1x1x8x128xbf16>
    tpu.vector_store %arg4[%c0_89, %c5, %c0_90, %c0_91], %196 {strides = array<i32>} : memref<1x8x8x128xbf16, #tpu.memory_space<vmem>>, vector<1x1x8x128xbf16>,
    %c6_i32 = arith.constant 6 : i32
    %197 = arith.addi %14, %c6_i32 : i32
    %c0_92 = arith.constant 0 : index
    %198 = arith.index_cast %197 : i32 to index
    %c0_93 = arith.constant 0 : index
    %c0_94 = arith.constant 0 : index
    %199 = vector.load %arg2[%c0_92, %198, %c0_93, %c0_94] : memref<1x9x9x16xbf16, #tpu.memory_space<vmem>>, vector<1x2x9x16xbf16>
    %200 = vector.shape_cast %199 : vector<1x2x9x16xbf16> to vector<2x9x16xbf16>
    %201 = vector.extract_strided_slice %200 {offsets = [0, 0, 0], sizes = [1, 8, 16], strides = [1, 1, 1]} : vector<2x9x16xbf16> to vector<1x8x16xbf16>
    %202 = vector.shape_cast %201 : vector<1x8x16xbf16> to vector<8x16xbf16>
    %203 = vector.extract_strided_slice %200 {offsets = [0, 1, 0], sizes = [1, 8, 16], strides = [1, 1, 1]} : vector<2x9x16xbf16> to vector<1x8x16xbf16>
    %204 = vector.shape_cast %203 : vector<1x8x16xbf16> to vector<8x16xbf16>
    %205 = vector.extract_strided_slice %200 {offsets = [1, 0, 0], sizes = [1, 8, 16], strides = [1, 1, 1]} : vector<2x9x16xbf16> to vector<1x8x16xbf16>
    %206 = vector.shape_cast %205 : vector<1x8x16xbf16> to vector<8x16xbf16>
    %207 = vector.extract_strided_slice %200 {offsets = [1, 1, 0], sizes = [1, 8, 16], strides = [1, 1, 1]} : vector<2x9x16xbf16> to vector<1x8x16xbf16>
    %208 = vector.shape_cast %207 : vector<1x8x16xbf16> to vector<8x16xbf16>
    %cst_95 = arith.constant dense<0.000000e+00> : vector<8x128xf32>
    %209 = tpu.matmul %202, %6, %cst_95 {dimension_numbers = #tpu.dot_dimension_numbers<[1], [0], [0], [1], [0, 0, 1, 1], [], []>} : vector<8x16xbf16>, vector<16x128xbf16>, vector<8x128xf32> -> vector<8x128xf32>
    %cst_96 = arith.constant dense<0.000000e+00> : vector<8x128xf32>
    %210 = tpu.matmul %204, %8, %cst_96 {dimension_numbers = #tpu.dot_dimension_numbers<[1], [0], [0], [1], [0, 0, 1, 1], [], []>} : vector<8x16xbf16>, vector<16x128xbf16>, vector<8x128xf32> -> vector<8x128xf32>
    %211 = arith.addf %209, %210 : vector<8x128xf32>
    %cst_97 = arith.constant dense<0.000000e+00> : vector<8x128xf32>
    %212 = tpu.matmul %206, %10, %cst_97 {dimension_numbers = #tpu.dot_dimension_numbers<[1], [0], [0], [1], [0, 0, 1, 1], [], []>} : vector<8x16xbf16>, vector<16x128xbf16>, vector<8x128xf32> -> vector<8x128xf32>
    %213 = arith.addf %211, %212 : vector<8x128xf32>
    %cst_98 = arith.constant dense<0.000000e+00> : vector<8x128xf32>
    %214 = tpu.matmul %208, %12, %cst_98 {dimension_numbers = #tpu.dot_dimension_numbers<[1], [0], [0], [1], [0, 0, 1, 1], [], []>} : vector<8x16xbf16>, vector<16x128xbf16>, vector<8x128xf32> -> vector<8x128xf32>
    %215 = arith.addf %213, %214 : vector<8x128xf32>
    %cst_99 = arith.constant dense<0.000000e+00> : vector<128xf32>
    %216 = vector.multi_reduction <add>, %215, %cst_99 [0] : vector<8x128xf32> to vector<128xf32>
    %217 = vector.shape_cast %216 : vector<128xf32> to vector<1x128xf32>
    %218 = arith.addf %188, %217 : vector<1x128xf32>
    %219 = arith.mulf %215, %215 : vector<8x128xf32>
    %cst_100 = arith.constant dense<0.000000e+00> : vector<128xf32>
    %220 = vector.multi_reduction <add>, %219, %cst_100 [0] : vector<8x128xf32> to vector<128xf32>
    %221 = vector.shape_cast %220 : vector<128xf32> to vector<1x128xf32>
    %222 = arith.addf %192, %221 : vector<1x128xf32>
    %223 = arith.truncf %215 : vector<8x128xf32> to vector<8x128xbf16>
    %c0_101 = arith.constant 0 : index
    %c6 = arith.constant 6 : index
    %c0_102 = arith.constant 0 : index
    %c0_103 = arith.constant 0 : index
    %224 = vector.load %arg4[%c0_101, %c6, %c0_102, %c0_103] : memref<1x8x8x128xbf16, #tpu.memory_space<vmem>>, vector<1x1x8x128xbf16>
    %225 = vector.shape_cast %224 : vector<1x1x8x128xbf16> to vector<8x128xbf16>
    %226 = vector.shape_cast %223 : vector<8x128xbf16> to vector<1x1x8x128xbf16>
    tpu.vector_store %arg4[%c0_101, %c6, %c0_102, %c0_103], %226 {strides = array<i32>} : memref<1x8x8x128xbf16, #tpu.memory_space<vmem>>, vector<1x1x8x128xbf16>,
    %c7_i32 = arith.constant 7 : i32
    %227 = arith.addi %14, %c7_i32 : i32
    %c0_104 = arith.constant 0 : index
    %228 = arith.index_cast %227 : i32 to index
    %c0_105 = arith.constant 0 : index
    %c0_106 = arith.constant 0 : index
    %229 = vector.load %arg2[%c0_104, %228, %c0_105, %c0_106] : memref<1x9x9x16xbf16, #tpu.memory_space<vmem>>, vector<1x2x9x16xbf16>
    %230 = vector.shape_cast %229 : vector<1x2x9x16xbf16> to vector<2x9x16xbf16>
    %231 = vector.extract_strided_slice %230 {offsets = [0, 0, 0], sizes = [1, 8, 16], strides = [1, 1, 1]} : vector<2x9x16xbf16> to vector<1x8x16xbf16>
    %232 = vector.shape_cast %231 : vector<1x8x16xbf16> to vector<8x16xbf16>
    %233 = vector.extract_strided_slice %230 {offsets = [0, 1, 0], sizes = [1, 8, 16], strides = [1, 1, 1]} : vector<2x9x16xbf16> to vector<1x8x16xbf16>
    %234 = vector.shape_cast %233 : vector<1x8x16xbf16> to vector<8x16xbf16>
    %235 = vector.extract_strided_slice %230 {offsets = [1, 0, 0], sizes = [1, 8, 16], strides = [1, 1, 1]} : vector<2x9x16xbf16> to vector<1x8x16xbf16>
    %236 = vector.shape_cast %235 : vector<1x8x16xbf16> to vector<8x16xbf16>
    %237 = vector.extract_strided_slice %230 {offsets = [1, 1, 0], sizes = [1, 8, 16], strides = [1, 1, 1]} : vector<2x9x16xbf16> to vector<1x8x16xbf16>
    %238 = vector.shape_cast %237 : vector<1x8x16xbf16> to vector<8x16xbf16>
    %cst_107 = arith.constant dense<0.000000e+00> : vector<8x128xf32>
    %239 = tpu.matmul %232, %6, %cst_107 {dimension_numbers = #tpu.dot_dimension_numbers<[1], [0], [0], [1], [0, 0, 1, 1], [], []>} : vector<8x16xbf16>, vector<16x128xbf16>, vector<8x128xf32> -> vector<8x128xf32>
    %cst_108 = arith.constant dense<0.000000e+00> : vector<8x128xf32>
    %240 = tpu.matmul %234, %8, %cst_108 {dimension_numbers = #tpu.dot_dimension_numbers<[1], [0], [0], [1], [0, 0, 1, 1], [], []>} : vector<8x16xbf16>, vector<16x128xbf16>, vector<8x128xf32> -> vector<8x128xf32>
    %241 = arith.addf %239, %240 : vector<8x128xf32>
    %cst_109 = arith.constant dense<0.000000e+00> : vector<8x128xf32>
    %242 = tpu.matmul %236, %10, %cst_109 {dimension_numbers = #tpu.dot_dimension_numbers<[1], [0], [0], [1], [0, 0, 1, 1], [], []>} : vector<8x16xbf16>, vector<16x128xbf16>, vector<8x128xf32> -> vector<8x128xf32>
    %243 = arith.addf %241, %242 : vector<8x128xf32>
    %cst_110 = arith.constant dense<0.000000e+00> : vector<8x128xf32>
    %244 = tpu.matmul %238, %12, %cst_110 {dimension_numbers = #tpu.dot_dimension_numbers<[1], [0], [0], [1], [0, 0, 1, 1], [], []>} : vector<8x16xbf16>, vector<16x128xbf16>, vector<8x128xf32> -> vector<8x128xf32>
    %245 = arith.addf %243, %244 : vector<8x128xf32>
    %cst_111 = arith.constant dense<0.000000e+00> : vector<128xf32>
    %246 = vector.multi_reduction <add>, %245, %cst_111 [0] : vector<8x128xf32> to vector<128xf32>
    %247 = vector.shape_cast %246 : vector<128xf32> to vector<1x128xf32>
    %248 = arith.addf %218, %247 : vector<1x128xf32>
    %249 = arith.mulf %245, %245 : vector<8x128xf32>
    %cst_112 = arith.constant dense<0.000000e+00> : vector<128xf32>
    %250 = vector.multi_reduction <add>, %249, %cst_112 [0] : vector<8x128xf32> to vector<128xf32>
    %251 = vector.shape_cast %250 : vector<128xf32> to vector<1x128xf32>
    %252 = arith.addf %222, %251 : vector<1x128xf32>
    %253 = arith.truncf %245 : vector<8x128xf32> to vector<8x128xbf16>
    %c0_113 = arith.constant 0 : index
    %c7 = arith.constant 7 : index
    %c0_114 = arith.constant 0 : index
    %c0_115 = arith.constant 0 : index
    %254 = vector.load %arg4[%c0_113, %c7, %c0_114, %c0_115] : memref<1x8x8x128xbf16, #tpu.memory_space<vmem>>, vector<1x1x8x128xbf16>
    %255 = vector.shape_cast %254 : vector<1x1x8x128xbf16> to vector<8x128xbf16>
    %256 = vector.shape_cast %253 : vector<8x128xbf16> to vector<1x1x8x128xbf16>
    tpu.vector_store %arg4[%c0_113, %c7, %c0_114, %c0_115], %256 {strides = array<i32>} : memref<1x8x8x128xbf16, #tpu.memory_space<vmem>>, vector<1x1x8x128xbf16>,
    %c0_116 = arith.constant 0 : index
    %c0_117 = arith.constant 0 : index
    %257 = vector.load %arg5[%c0_116, %c0_117] : memref<1x128xf32, #tpu.memory_space<vmem>>, vector<1x128xf32>
    %258 = arith.addf %257, %248 : vector<1x128xf32>
    %c0_118 = arith.constant 0 : index
    %c0_119 = arith.constant 0 : index
    %259 = vector.load %arg5[%c0_118, %c0_119] : memref<1x128xf32, #tpu.memory_space<vmem>>, vector<1x128xf32>
    tpu.vector_store %arg5[%c0_118, %c0_119], %258 {strides = array<i32>} : memref<1x128xf32, #tpu.memory_space<vmem>>, vector<1x128xf32>,
    %c0_120 = arith.constant 0 : index
    %c0_121 = arith.constant 0 : index
    %260 = vector.load %arg6[%c0_120, %c0_121] : memref<1x128xf32, #tpu.memory_space<vmem>>, vector<1x128xf32>
    %261 = arith.addf %260, %252 : vector<1x128xf32>
    %c0_122 = arith.constant 0 : index
    %c0_123 = arith.constant 0 : index
    %262 = vector.load %arg6[%c0_122, %c0_123] : memref<1x128xf32, #tpu.memory_space<vmem>>, vector<1x128xf32>
    tpu.vector_store %arg6[%c0_122, %c0_123], %261 {strides = array<i32>} : memref<1x128xf32, #tpu.memory_space<vmem>>, vector<1x128xf32>,
    return
  }
  func.func @transform_0(%arg0: i32, %arg1: i32) -> (i32, i32, i32, i32) {
    %c0_i32 = arith.constant 0 : i32
    %c0_i32_0 = arith.constant 0 : i32
    %c0_i32_1 = arith.constant 0 : i32
    %c0_i32_2 = arith.constant 0 : i32
    return %arg0, %c0_i32, %c0_i32_0, %c0_i32_1 : i32, i32, i32, i32
  }
  func.func @transform_1(%arg0: i32, %arg1: i32) -> (i32, i32, i32, i32) {
    %c0_i32 = arith.constant 0 : i32
    %c0_i32_0 = arith.constant 0 : i32
    %c0_i32_1 = arith.constant 0 : i32
    %c0_i32_2 = arith.constant 0 : i32
    %c0_i32_3 = arith.constant 0 : i32
    return %c0_i32, %c0_i32_0, %c0_i32_1, %c0_i32_2 : i32, i32, i32, i32
  }
  func.func @transform_2(%arg0: i32, %arg1: i32) -> (i32, i32, i32, i32) {
    %c0_i32 = arith.constant 0 : i32
    %c0_i32_0 = arith.constant 0 : i32
    %c0_i32_1 = arith.constant 0 : i32
    return %arg0, %arg1, %c0_i32, %c0_i32_0 : i32, i32, i32, i32
  }
  func.func @transform_3(%arg0: i32, %arg1: i32) -> (i32, i32) {
    %c0_i32 = arith.constant 0 : i32
    %c0_i32_0 = arith.constant 0 : i32
    %c0_i32_1 = arith.constant 0 : i32
    return %c0_i32, %c0_i32_0 : i32, i32
  }
  func.func @transform_4(%arg0: i32, %arg1: i32) -> (i32, i32) {
    %c0_i32 = arith.constant 0 : i32
    %c0_i32_0 = arith.constant 0 : i32
    %c0_i32_1 = arith.constant 0 : i32
    return %c0_i32, %c0_i32_0 : i32, i32
  }
}

module attributes {stable_mosaic.version = 11 : i64} {
  func.func @bn_lrelu_kernel(%arg0: i32, %arg1: i32, %arg2: memref<1x8x8x128xbf16, #tpu.memory_space<vmem>>, %arg3: memref<1x128xf32, #tpu.memory_space<vmem>>, %arg4: memref<1x128xf32, #tpu.memory_space<vmem>>, %arg5: memref<1x8x8x128xf32, #tpu.memory_space<vmem>>) attributes {dimension_semantics = [#tpu.dimension_semantics<parallel>, #tpu.dimension_semantics<parallel>], iteration_bounds = array<i64: 2, 1>, scalar_prefetch = 0 : i64, scratch_operands = 0 : i64, tpu.core_type = #tpu.core_type<tc>, window_params = [{transform_indices = @transform_0, window_bounds = array<i64: 1, 8, 8, 128>}, {pipeline_mode = #tpu.pipeline_mode<synchronous>, transform_indices = @transform_1, window_bounds = array<i64: 1, 128>}, {pipeline_mode = #tpu.pipeline_mode<synchronous>, transform_indices = @transform_2, window_bounds = array<i64: 1, 128>}, {transform_indices = @transform_3, window_bounds = array<i64: 1, 8, 8, 128>}]} {
    %c0 = arith.constant 0 : index
    %c0_0 = arith.constant 0 : index
    %c0_1 = arith.constant 0 : index
    %c0_2 = arith.constant 0 : index
    %0 = vector.load %arg2[%c0, %c0_0, %c0_1, %c0_2] : memref<1x8x8x128xbf16, #tpu.memory_space<vmem>>, vector<1x8x8x128xbf16>
    %1 = vector.shape_cast %0 : vector<1x8x8x128xbf16> to vector<8x8x128xbf16>
    %2 = arith.extf %1 : vector<8x8x128xbf16> to vector<8x8x128xf32>
    %c0_3 = arith.constant 0 : index
    %c0_4 = arith.constant 0 : index
    %3 = vector.load %arg3[%c0_3, %c0_4] : memref<1x128xf32, #tpu.memory_space<vmem>>, vector<1x128xf32>
    %4 = vector.shape_cast %3 : vector<1x128xf32> to vector<1x1x128xf32>
    %5 = vector.broadcast %4 : vector<1x1x128xf32> to vector<8x8x128xf32>
    %6 = arith.mulf %2, %5 : vector<8x8x128xf32>
    %c0_5 = arith.constant 0 : index
    %c0_6 = arith.constant 0 : index
    %7 = vector.load %arg4[%c0_5, %c0_6] : memref<1x128xf32, #tpu.memory_space<vmem>>, vector<1x128xf32>
    %8 = vector.shape_cast %7 : vector<1x128xf32> to vector<1x1x128xf32>
    %9 = vector.broadcast %8 : vector<1x1x128xf32> to vector<8x8x128xf32>
    %10 = arith.addf %6, %9 : vector<8x8x128xf32>
    %cst = arith.constant 0.000000e+00 : f32
    %11 = vector.broadcast %cst : f32 to vector<8x8x128xf32>
    %12 = arith.cmpf oge, %10, %11 : vector<8x8x128xf32>
    %cst_7 = arith.constant 2.000000e-01 : f32
    %13 = vector.broadcast %cst_7 : f32 to vector<8x8x128xf32>
    %14 = arith.mulf %13, %10 : vector<8x8x128xf32>
    %15 = arith.select %12, %10, %14 : vector<8x8x128xi1>, vector<8x8x128xf32>
    %c0_8 = arith.constant 0 : index
    %c0_9 = arith.constant 0 : index
    %c0_10 = arith.constant 0 : index
    %c0_11 = arith.constant 0 : index
    %16 = vector.load %arg5[%c0_8, %c0_9, %c0_10, %c0_11] : memref<1x8x8x128xf32, #tpu.memory_space<vmem>>, vector<1x8x8x128xf32>
    %17 = vector.shape_cast %16 : vector<1x8x8x128xf32> to vector<8x8x128xf32>
    %18 = vector.shape_cast %15 : vector<8x8x128xf32> to vector<1x8x8x128xf32>
    tpu.vector_store %arg5[%c0_8, %c0_9, %c0_10, %c0_11], %18 {strides = array<i32>} : memref<1x8x8x128xf32, #tpu.memory_space<vmem>>, vector<1x8x8x128xf32>,
    return
  }
  func.func @transform_0(%arg0: i32, %arg1: i32) -> (i32, i32, i32, i32) {
    %c0_i32 = arith.constant 0 : i32
    %c0_i32_0 = arith.constant 0 : i32
    %c0_i32_1 = arith.constant 0 : i32
    return %arg0, %arg1, %c0_i32, %c0_i32_0 : i32, i32, i32, i32
  }
  func.func @transform_1(%arg0: i32, %arg1: i32) -> (i32, i32) {
    %c0_i32 = arith.constant 0 : i32
    %c0_i32_0 = arith.constant 0 : i32
    %c0_i32_1 = arith.constant 0 : i32
    return %c0_i32, %c0_i32_0 : i32, i32
  }
  func.func @transform_2(%arg0: i32, %arg1: i32) -> (i32, i32) {
    %c0_i32 = arith.constant 0 : i32
    %c0_i32_0 = arith.constant 0 : i32
    %c0_i32_1 = arith.constant 0 : i32
    return %c0_i32, %c0_i32_0 : i32, i32
  }
  func.func @transform_3(%arg0: i32, %arg1: i32) -> (i32, i32, i32, i32) {
    %c0_i32 = arith.constant 0 : i32
    %c0_i32_0 = arith.constant 0 : i32
    %c0_i32_1 = arith.constant 0 : i32
    return %arg0, %arg1, %c0_i32, %c0_i32_0 : i32, i32, i32, i32
  }
}

</mosaic_0001>

<bundles_post_ra>
// kernel: down_block_forward.3
= control target key start
LH: loop header
LB: loop body
LE: loop exit
PB: predicated region body
PF: predicated region fallthrough
CT: control target
= control target key end

     0   :  { %s477_s12 = smov 0   ;;  %s479_s13 = smov 0   ;;  %s530_s0 = inlined_call_operand.vmem [shape: bf16[2,8,8,128], index: 0, kind: input, shape index: {}]   ;;  %s531_s1 = inlined_call_operand.vmem [shape: f32[1,128], index: 1, kind: input, shape index: {}]   ;;  %s532_s2 = inlined_call_operand.vmem [shape: f32[1,128], index: 2, kind: input, shape index: {}]   ;;  %s533_s3 = inlined_call_operand.vmem [shape: f32[2,8,8,128], index: 3, kind: output, shape index: {}]  }
   0x1   :  { %s481_s14 = smov 0  }
   0x2 LB: > { %s25_s15 = sadd.s32 1, %s451_s13  ;;  %p379_p0 = scmp.ge.s32.totalorder %s455_s14, 1  ;;  %s455_s14 = sphi %s481_s14, %s13_s14   ;;  %s451_s13 = sphi %s479_s13, %s535_s13   ;;  %s447_s12 = sphi %s477_s12, %s534_s12  }
   0x3   : > { %p27_p1 = scmp.ge.s32.totalorder %s25_s15, 2  ;;  %p158_p2 = scmp.lt.s32.totalorder %s455_s14, 3 }
   0x5   : > { %s537_s15 = smov (%p27_p1, %s25_s15), 0  ;;  %p159_p3 = pnand %p379_p0, %p158_p2 }
   0x6   : > { %p191_p4 = scmp.lt.s32.totalorder (!%p159_p3), %s447_s12, 1 }
   0x7   : > { %162 = sbr.rel (%p159_p3) target bundleno = 31 (0x1f), region = 32 }
   0xc   : > { %s539_s12 = smov (!%p191_p4, %s447_s12), 1  ;;  %v384_v0 = vld [vmem:[%s531_s1] ss:$0 sm:$0xff] }
   0xd   : > { %s388_s16 = sshll.u32 %s539_s12, 5  ;;  %v385_v9 = vld [vmem:[%s532_s2] ss:$0 sm:$0xff]  ;;  %s389_s24 = sshll.u32 %s539_s12, 6 }
   0xe   : > { %s198_s19 = scalar_lea.vmem %s530_s0, %s388_s16  ;;  %s511_s27 = scalar_lea.vmem %s533_s3, %s389_s24 }
   0xf   : > { %v391_v1 = vld [vmem:[%s198_s19] sm:$0xff]   ;;  %v406_v2 = vld [vmem:[%s198_s19 + $0x8] sm:$0xff]   ;;  %v407_v3 = vld [vmem:[%s198_s19 + $0x10] sm:$0xff]  }
  0x10   : > { %v392_v4 = vunpack.c.l.bf16 %v391_v1  ;;  %v393_v5 = vunpack.c.h.bf16 %v391_v1  ;;  %v396_v6 = vunpack.c.l.bf16 %v406_v2  ;;  %v397_v7 = vunpack.c.h.bf16 %v406_v2  ;;  %v408_v8 = vld [vmem:[%s198_s19 + $0x18] sm:$0xff]  }
  0x11   : > { %v400_v10 = vunpack.c.l.bf16 %v407_v3  ;;  %v401_v11 = vunpack.c.h.bf16 %v407_v3  ;;  %v404_v12 = vunpack.c.l.bf16 %v408_v8  ;;  %v405_v13 = vunpack.c.h.bf16 %v408_v8 }
  0x12   : > { %v233_v14 = vmul.f32 %v392_v4, %v384_v0  ;;  %v234_v15 = vmul.f32 %v393_v5, %v384_v0  ;;  %v235_v16 = vmul.f32 %v396_v6, %v384_v0  ;;  %v236_v17 = vmul.f32 %v397_v7, %v384_v0 }
  0x13   : > { %v237_v18 = vmul.f32 %v400_v10, %v384_v0  ;;  %v238_v19 = vmul.f32 %v401_v11, %v384_v0  ;;  %v239_v20 = vmul.f32 %v404_v12, %v384_v0  ;;  %v240_v21 = vmul.f32 %v405_v13, %v384_v0 }
  0x14   : > { %v248_v22 = vadd.f32 %v385_v9, %v233_v14  ;;  %v249_v23 = vadd.f32 %v385_v9, %v234_v15  ;;  %v250_v24 = vadd.f32 %v385_v9, %v235_v16  ;;  %v251_v25 = vadd.f32 %v385_v9, %v236_v17 }
  0x15   : > { %v252_v26 = vadd.f32 %v385_v9, %v237_v18  ;;  %v253_v27 = vadd.f32 %v385_v9, %v238_v19  ;;  %v254_v28 = vadd.f32 %v385_v9, %v239_v20  ;;  %v255_v29 = vadd.f32 %v385_v9, %v240_v21 }
  0x16   : > { %vm256_vm0 = vcmp.ge.f32.partialorder %v248_v22, 0.0  ;;  %v264_v30 = vmul.f32 0.2, %v248_v22  ;;  %vm257_vm1 = vcmp.ge.f32.partialorder %v249_v23, 0.0  ;;  %v265_v31 = vmul.f32 0.2, %v249_v23 }
  0x17   : > { %vm258_vm2 = vcmp.ge.f32.partialorder %v250_v24, 0.0  ;;  %v266_v32 = vmul.f32 0.2, %v250_v24  ;;  %vm259_vm3 = vcmp.ge.f32.partialorder %v251_v25, 0.0  ;;  %v267_v33 = vmul.f32 0.2, %v251_v25 }
  0x18   : > { %v272_v34 = vsel %vm256_vm0, %v248_v22, %v264_v30  ;;  %v273_v35 = vsel %vm257_vm1, %v249_v23, %v265_v31  ;;  %vm260_vm4 = vcmp.ge.f32.partialorder %v252_v26, 0.0  ;;  %v268_v36 = vmul.f32 0.2, %v252_v26 }
  0x19   : > { %280 = vst [vmem:[%s511_s27] sm:$0xff] %v272_v34  ;;  %281 = vst [vmem:[%s511_s27 + $0x8] sm:$0xff] %v273_v35  ;;  %v274_v37 = vsel %vm258_vm2, %v250_v24, %v266_v32  ;;  %v275_v38 = vsel %vm259_vm3, %v251_v25, %v267_v33  ;;  %vm261_vm5 = vcmp.ge.f32.partialorder %v253_v27, 0.0  ;;  %v269_v39 = vmul.f32 0.2, %v253_v27 }
  0x1a   : > { %282 = vst [vmem:[%s511_s27 + $0x10] sm:$0xff] %v274_v37  ;;  %283 = vst [vmem:[%s511_s27 + $0x18] sm:$0xff] %v275_v38  ;;  %v276_v40 = vsel %vm260_vm4, %v252_v26, %v268_v36  ;;  %vm262_vm6 = vcmp.ge.f32.partialorder %v254_v28, 0.0  ;;  %v270_v41 = vmul.f32 0.2, %v254_v28  ;;  %vm263_vm7 = vcmp.ge.f32.partialorder %v255_v29, 0.0 }
  0x1b   : > { %284 = vst [vmem:[%s511_s27 + $0x20] sm:$0xff] %v276_v40  ;;  %v277_v42 = vsel %vm261_vm5, %v253_v27, %v269_v39  ;;  %v271_v43 = vmul.f32 0.2, %v255_v29 }
  0x1c   : > { %285 = vst [vmem:[%s511_s27 + $0x28] sm:$0xff] %v277_v42  ;;  %v278_v44 = vsel %vm262_vm6, %v254_v28, %v270_v41 }
  0x1d   : > { %286 = vst [vmem:[%s511_s27 + $0x30] sm:$0xff] %v278_v44  ;;  %v279_v45 = vsel %vm263_vm7, %v255_v29, %v271_v43 }
  0x1e   : > { %287 = vst [vmem:[%s511_s27 + $0x38] sm:$0xff] %v279_v45 }
  0x1f PF: > { %s13_s14 = sadd.s32 1, %s455_s14   ;;  %s534_s12 = smov %s451_s13 }
  0x20   : > { %p10_p5 = scmp.ge.s32.totalorder %s13_s14, 4   ;;  %s535_s13 = smov %s537_s15 }
  0x22   :  { %12 = sbr.rel (!%p10_p5) target bundleno = 2 (0x2), region = 62 }

// kernel: down_block_forward.2
= control target key start
LH: loop header
LB: loop body
LE: loop exit
PB: predicated region body
PF: predicated region fallthrough
CT: control target
= control target key end

     0   :  { %s2643_s15 = smov 0   ;;  %s2645_s16 = smov 0   ;;  %s2932_s0 = inlined_call_operand.vmem [shape: bf16[2,9,9,16], index: 0, kind: input, shape index: {}]   ;;  %s2933_s1 = inlined_call_operand.vmem [shape: bf16[2,2,16,128], index: 1, kind: input, shape index: {}]   ;;  %s2934_s2 = inlined_call_operand.vmem [shape: bf16[2,8,8,128], index: 2, kind: output, shape index: {0}]   ;;  %s2935_s3 = inlined_call_operand.vmem [shape: f32[1,128], index: 3, kind: output, shape index: {1}]   ;;  %s2936_s4 = inlined_call_operand.vmem [shape: f32[1,128], index: 4, kind: output, shape index: {2}]  }
   0x1   :  { %s2647_s17 = smov 0  }
   0x2 LB: > { %s27_s18 = sadd.s32 1, %s2609_s16  ;;  %p2185_p0 = scmp.ge.s32.totalorder %s2613_s17, 1  ;;  %s2613_s17 = sphi %s2647_s17, %s15_s17   ;;  %s2609_s16 = sphi %s2645_s16, %s2938_s16   ;;  %s2605_s15 = sphi %s2643_s15, %s2937_s15  }
   0x3   : > { %p29_p1 = scmp.ge.s32.totalorder %s27_s18, 2  ;;  %p171_p2 = scmp.lt.s32.totalorder %s2613_s17, 3 }
   0x5   : > { %s2940_s18 = smov (%p29_p1, %s27_s18), 0  ;;  %p172_p3 = pnand %p2185_p0, %p171_p2 }
   0x6   : > { %p201_p4 = scmp.lt.s32.totalorder (!%p172_p3), %s2605_s15, 1  ;;  %p217_p5 = scmp.eq.s32.totalorder (!%p172_p3), %s2605_s15, 0 }
   0x7   : > { %175 = sbr.rel (%p172_p3) target bundleno = 363 (0x16b), region = 28 }
   0xc   : > { %s2942_s15 = smov (!%p201_p4, %s2605_s15), 1  ;;  %222 = sbr.rel (!%p217_p5) target bundleno = 17 (0x11), region = 32  ;;  %v2615_v0 = vmov (%p217_p5), 0.0  }
   0xd   : > { %s2543_s19 = smul.u32 72, %s2942_s15  ;;  %s2285_s20 = sshll.u32 %s2942_s15, 5  ;;  %223 = vst [vmem:[%s2935_s3] sm:$0x1] (%p217_p5), %v2615_v0  ;;  %224 = vst [vmem:[%s2936_s4] sm:$0x1] (%p217_p5), %v2615_v0 }
   0xe   : > { %s2664_s23 = scalar_lea.vmem %s2934_s2, %s2285_s20 }
   0xf   : > { %s2669_s26 = scalar_lea.vmem %s2932_s0, %s2543_s19 }
  0x11 PF: > { %v2680_v1 = vld [vmem:[%s2933_s1] sm:$0xff]   ;;  %v2616_v2 = vmov 0.0   ;;  %v2687_v3 = vld [vmem:[%s2933_s1 + $0x8] sm:$0xff]   ;;  %vm2617_vm0 = vmmov 0   ;;  %vm262_vm1 = vcmask 130048   ;;  %v2702_v7 = vld [vmem:[%s2933_s1 + $0x18] sm:$0xff]  }
  0x12   : > { %2357 = vmatprep.subr.bf16.mxu1 %v2616_v2  ;;  %2351 = vmatprep.subr.bf16.mxu0 %v2616_v2  ;;  %v240_v4 = vld [vmem:[%s2669_s26] sm:$0xf]  ;;  %v241_v5 = vld [vmem:[%s2669_s26 + $0x4] sm:$0x1]  ;;  %v242_v8 = vld [vmem:[%s2669_s26 + $0x8] sm:$0xf] }
  0x13   : > { %2358 = vmatpush3.bf16.msra.mxu1 %v2680_v1  ;;  %2359 = vmatprep.mubr.msk.bf16.mxu1 %vm2617_vm0, %v2616_v2  ;;  %v2196_v6 = vcombine.low %v240_v4, %v241_v5  ;;  %v243_v11 = vld [vmem:[%s2669_s26 + $0xc] sm:$0x1]  ;;  %v2713_v14 = vld [vmem:[%s2933_s1 + $0x10] sm:$0xff]   ;;  %v2206_v17 = vld [vmem:[%s2669_s26 + $0x8] sm:$0xf] }
  0x14   : > { %2352 = vmatpush3.bf16.msra.mxu0 %v2687_v3  ;;  %2353 = vmatprep.mubr.msk.bf16.mxu0 %vm2617_vm0, %v2616_v2  ;;  %v2203_v12 = vcombine.low %v242_v8, %v243_v11  ;;  %v2207_v18 = vld [vmem:[%s2669_s26 + $0xc] sm:$0x1]  ;;  %v2208_v22 = vld [vmem:[%s2669_s26 + $0x10] sm:$0xf]  ;;  %v2209_v23 = vld [vmem:[%s2669_s26 + $0x14] sm:$0x1] }
  0x15   : > { %2363 = vmatprep.subr.bf16.mxu0 %v2616_v2  ;;  %2369 = vmatprep.subr.bf16.mxu1 %v2616_v2  ;;  %v250_v9 = vshrl.u32 %v2196_v6, 16  ;;  %v252_v10 = vshll.u32 %v2196_v6, 16  ;;  %v2210_v21 = vcombine.low %v2206_v17, %v2207_v18  ;;  %v2214_v25 = vcombine.low %v2208_v22, %v2209_v23  ;;  %v2217_v33 = vld [vmem:[%s2669_s26 + $0x10] sm:$0xf]  ;;  %v2218_v34 = vld [vmem:[%s2669_s26 + $0x14] sm:$0x1] }
  0x16   : > { %2360 = vmatmul.mubr.msk.bf16.vlgmr.msra.gmra.mxu1 %vm262_vm1, %v240_v4  ;;  %v411_v15 = vshrl.u32 %v2203_v12, 16  ;;  %v413_v16 = vshll.u32 %v2203_v12, 16  ;;  %v2221_v36 = vcombine.low %v2217_v33, %v2218_v34  ;;  %v2219_v37 = vld [vmem:[%s2669_s26 + $0x18] sm:$0xf]  ;;  %v2220_v38 = vld [vmem:[%s2669_s26 + $0x1c] sm:$0x1] }
  0x17   : > { %2370 = vmatpush3.bf16.msra.mxu1 %v2702_v7  ;;  %2371 = vmatprep.mubr.msk.bf16.mxu1 %vm2617_vm0, %v2616_v2  ;;  %v254_v13 = vrot.slane %v252_v10, 1  ;;  %v500_v26 = vshll.u32 %v2210_v21, 16  ;;  %v642_v27 = vshll.u32 %v2214_v25, 16  ;;  %v498_v28 = vshrl.u32 %v2210_v21, 16  ;;  %v2228_v47 = vld [vmem:[%s2669_s26 + $0x18] sm:$0xf] }
  0x18   : > { %2381 = vmatprep.subr.bf16.mxu1 %v2616_v2  ;;  %v415_v20 = vrot.slane %v413_v16, 1  ;;  %v640_v30 = vshrl.u32 %v2214_v25, 16  ;;  %v2225_v39 = vcombine.low %v2219_v37, %v2220_v38  ;;  %v724_v40 = vshll.u32 %v2221_v36, 16  ;;  %v2229_v48 = vld [vmem:[%s2669_s26 + $0x1c] sm:$0x1] }
  0x19   : > { %v255_v19 = vor.u32 %v254_v13, %v250_v9  ;;  %v502_v29 = vrot.slane %v500_v26, 1  ;;  %v644_v31 = vrot.slane %v642_v27, 1  ;;  %v722_v42 = vshrl.u32 %v2221_v36, 16  ;;  %v2230_v51 = vld [vmem:[%s2669_s26 + $0x20] sm:$0xf] }
  0x1a   : > { %v416_v24 = vor.u32 %v415_v20, %v411_v15  ;;  %v866_v41 = vshll.u32 %v2225_v39, 16  ;;  %v726_v43 = vrot.slane %v724_v40, 1  ;;  %v864_v44 = vshrl.u32 %v2225_v39, 16  ;;  %v2231_v52 = vld [vmem:[%s2669_s26 + $0x24] sm:$0x1] }
  0x1b   : > { %2354 = vmatmul.mubr.msk.bf16.vlgmr.msra.gmra.mxu0 %vm262_vm1, %v255_v19  ;;  %v503_v32 = vor.u32 %v502_v29, %v498_v28  ;;  %v645_v35 = vor.u32 %v644_v31, %v640_v30  ;;  %v2232_v50 = vcombine.low %v2228_v47, %v2229_v48  ;;  %v2236_v53 = vcombine.low %v2230_v51, %v2231_v52  ;;  %v2239_v61 = vld [vmem:[%s2669_s26 + $0x20] sm:$0xf]  ;;  %v2240_v62 = vld [vmem:[%s2669_s26 + $0x24] sm:$0x1]  ;;  %v2241_v4 = vld [vmem:[%s2669_s26 + $0x28] sm:$0xf] }
  0x1c   : > { %2364 = vmatpush3.bf16.msra.mxu0 %v2713_v14  ;;  %2365 = vmatprep.mubr.msk.bf16.mxu0 %vm2617_vm0, %v2616_v2  ;;  %v868_v45 = vrot.slane %v866_v41, 1  ;;  %v727_v46 = vor.u32 %v726_v43, %v722_v42  ;;  %v2243_v0 = vcombine.low %v2239_v61, %v2240_v62  ;;  %v2242_v5 = vld [vmem:[%s2669_s26 + $0x2c] sm:$0x1]  ;;  %v2250_v16 = vld [vmem:[%s2669_s26 + $0x28] sm:$0xf] }
  0x1d   : > { %2375 = vmatprep.subr.bf16.mxu0 %v2616_v2  ;;  %v948_v54 = vshll.u32 %v2232_v50, 16  ;;  %v1090_v55 = vshll.u32 %v2236_v53, 16  ;;  %v946_v56 = vshrl.u32 %v2232_v50, 16  ;;  %v1088_v58 = vshrl.u32 %v2236_v53, 16  ;;  %v2252_v20 = vld [vmem:[%s2669_s26 + $0x30] sm:$0xf] }
  0x1e   : > { %2372 = vmatmul.mubr.msk.bf16.vlgmr.msra.gmra.mxu1 %vm262_vm1, %v416_v24  ;;  %v869_v49 = vor.u32 %v868_v45, %v864_v44  ;;  %v2247_v6 = vcombine.low %v2241_v4, %v2242_v5  ;;  %v1170_v10 = vshrl.u32 %v2243_v0, 16  ;;  %v2253_v21 = vld [vmem:[%s2669_s26 + $0x34] sm:$0x1]  ;;  %v2261_v30 = vld [vmem:[%s2669_s26 + $0x30] sm:$0xf] }
  0x1f   : > { %2382 = vmatpush3.bf16.msra.mxu1 %v2680_v1  ;;  %2383 = vmatprep.mubr.msk.bf16.mxu1 %vm2617_vm0, %v2616_v2  ;;  %v950_v57 = vrot.slane %v948_v54, 1  ;;  %v1092_v59 = vrot.slane %v1090_v55, 1  ;;  %v2262_v31 = vld [vmem:[%s2669_s26 + $0x34] sm:$0x1]  ;;  %v2263_v34 = vld [vmem:[%s2669_s26 + $0x38] sm:$0xf] }
  0x20   : > { %2393 = vmatprep.subr.bf16.mxu1 %v2616_v2  ;;  %v1314_v9 = vshll.u32 %v2247_v6, 16  ;;  %v1312_v12 = vshrl.u32 %v2247_v6, 16  ;;  %v2272_v44 = vld [vmem:[%s2669_s26 + $0x38] sm:$0xf]  ;;  %v2273_v45 = vld [vmem:[%s2669_s26 + $0x3c] sm:$0x1] }
  0x21   : > { %v951_v60 = vor.u32 %v950_v57, %v946_v56  ;;  %v1093_v63 = vor.u32 %v1092_v59, %v1088_v58  ;;  %v2274_v48 = vld [vmem:[%s2669_s26 + $0x40] sm:$0xf] }
  0x22   : > { %v1316_v13 = vrot.slane %v1314_v9, 1 }
  0x23   : > { %2366 = vmatmul.mubr.msk.bf16.vlgmr.msra.gmra.mxu0 %vm262_vm1, %v242_v8  ;;  %v1172_v8 = vshll.u32 %v2243_v0, 16 }
  0x24   : > { %2376 = vmatpush3.bf16.msra.mxu0 %v2687_v3  ;;  %2377 = vmatprep.mubr.msk.bf16.mxu0 %vm2617_vm0, %v2616_v2  ;;  %v1317_v18 = vor.u32 %v1316_v13, %v1312_v12 }
  0x25   : > { %2387 = vmatprep.subr.bf16.mxu0 %v2616_v2  ;;  %v1174_v11 = vrot.slane %v1172_v8, 1 }
  0x26   : > { %2384 = vmatmul.mubr.msk.bf16.vlgmr.msra.gmra.mxu1 %vm262_vm1, %v2206_v17  ;;  %v2251_v17 = vld [vmem:[%s2669_s26 + $0x2c] sm:$0x1] }
  0x27   : > { %2394 = vmatpush3.bf16.msra.mxu1 %v2702_v7  ;;  %2395 = vmatprep.mubr.msk.bf16.mxu1 %vm2617_vm0, %v2616_v2  ;;  %v1175_v15 = vor.u32 %v1174_v11, %v1170_v10  ;;  %v2254_v19 = vcombine.low %v2250_v16, %v2251_v17 }
  0x28   : > { %2405 = vmatprep.subr.bf16.mxu1 %v2616_v2 }
  0x29   : > { %v1396_v23 = vshll.u32 %v2254_v19, 16  ;;  %v1394_v25 = vshrl.u32 %v2254_v19, 16 }
  0x2b   : > { %2378 = vmatmul.mubr.msk.bf16.vlgmr.msra.gmra.mxu0 %vm262_vm1, %v503_v32  ;;  %v1398_v26 = vrot.slane %v1396_v23, 1 }
  0x2c   : > { %2388 = vmatpush3.bf16.msra.mxu0 %v2713_v14  ;;  %2389 = vmatprep.mubr.msk.bf16.mxu0 %vm2617_vm0, %v2616_v2 }
  0x2d   : > { %2399 = vmatprep.subr.bf16.mxu0 %v2616_v2  ;;  %v1399_v29 = vor.u32 %v1398_v26, %v1394_v25 }
  0x2e   : > { %2396 = vmatmul.mubr.msk.bf16.vlgmr.msra.gmra.mxu1 %vm262_vm1, %v645_v35  ;;  %v2264_v35 = vld [vmem:[%s2669_s26 + $0x3c] sm:$0x1] }
  0x2f   : > { %2406 = vmatpush3.bf16.msra.mxu1 %v2680_v1  ;;  %2407 = vmatprep.mubr.msk.bf16.mxu1 %vm2617_vm0, %v2616_v2  ;;  %v2269_v36 = vcombine.low %v2263_v34, %v2264_v35 }
  0x30   : > { %2417 = vmatprep.subr.bf16.mxu1 %v2616_v2 }
  0x31   : > { %v1762_v38 = vshll.u32 %v2269_v36, 16  ;;  %v1760_v41 = vshrl.u32 %v2269_v36, 16 }
  0x33   : > { %2390 = vmatmul.mubr.msk.bf16.vlgmr.msra.gmra.mxu0 %vm262_vm1, %v2208_v22  ;;  %v2258_v22 = vcombine.low %v2252_v20, %v2253_v21  ;;  %v1764_v42 = vrot.slane %v1762_v38, 1 }
  0x34   : > { %2400 = vmatpush3.bf16.msra.mxu0 %v2687_v3  ;;  %2401 = vmatprep.mubr.msk.bf16.mxu0 %vm2617_vm0, %v2616_v2 }
  0x35   : > { %2411 = vmatprep.subr.bf16.mxu0 %v2616_v2  ;;  %v1538_v24 = vshll.u32 %v2258_v22, 16  ;;  %v1536_v27 = vshrl.u32 %v2258_v22, 16 }
  0x36   : > { %2408 = vmatmul.mubr.msk.bf16.vlgmr.msra.gmra.mxu1 %vm262_vm1, %v2217_v33  ;;  %v2265_v33 = vcombine.low %v2261_v30, %v2262_v31 }
  0x37   : > { %2418 = vmatpush3.bf16.msra.mxu1 %v2702_v7  ;;  %2419 = vmatprep.mubr.msk.bf16.mxu1 %vm2617_vm0, %v2616_v2  ;;  %v1540_v28 = vrot.slane %v1538_v24, 1 }
  0x38   : > { %2429 = vmatprep.subr.bf16.mxu1 %v2616_v2  ;;  %v1618_v39 = vshrl.u32 %v2265_v33, 16 }
  0x39   : > { %v1541_v32 = vor.u32 %v1540_v28, %v1536_v27 }
  0x3b   : > { %2402 = vmatmul.mubr.msk.bf16.vlgmr.msra.gmra.mxu0 %vm262_vm1, %v727_v46  ;;  %v1765_v46 = vor.u32 %v1764_v42, %v1760_v41 }
  0x3c   : > { %2412 = vmatpush3.bf16.msra.mxu0 %v2713_v14  ;;  %2413 = vmatprep.mubr.msk.bf16.mxu0 %vm2617_vm0, %v2616_v2 }
  0x3d   : > { %2423 = vmatprep.subr.bf16.mxu0 %v2616_v2 }
  0x3e   : > { %2420 = vmatmul.mubr.msk.bf16.vlgmr.msra.gmra.mxu1 %vm262_vm1, %v869_v49  ;;  %v2275_v49 = vld [vmem:[%s2669_s26 + $0x44] sm:$0x1] }
  0x3f   : > { %2430 = vmatpush3.bf16.msra.mxu1 %v2680_v1  ;;  %2431 = vmatprep.mubr.msk.bf16.mxu1 %vm2617_vm0, %v2616_v2  ;;  %v2280_v50 = vcombine.low %v2274_v48, %v2275_v49 }
  0x40   : > { %2441 = vmatprep.subr.bf16.mxu1 %v2616_v2 }
  0x41   : > { %v1986_v52 = vshll.u32 %v2280_v50, 16 }
  0x43   : > { %2414 = vmatmul.mubr.msk.bf16.vlgmr.msra.gmra.mxu0 %vm262_vm1, %v2219_v37  ;;  %v1620_v37 = vshll.u32 %v2265_v33, 16  ;;  %v1988_v55 = vrot.slane %v1986_v52, 1 }
  0x44   : > { %2424 = vmatpush3.bf16.msra.mxu0 %v2687_v3  ;;  %2425 = vmatprep.mubr.msk.bf16.mxu0 %vm2617_vm0, %v2616_v2 }
  0x45   : > { %2435 = vmatprep.subr.bf16.mxu0 %v2616_v2  ;;  %v1622_v40 = vrot.slane %v1620_v37, 1 }
  0x46   : > { %2432 = vmatmul.mubr.msk.bf16.vlgmr.msra.gmra.mxu1 %vm262_vm1, %v2228_v47  ;;  %v2276_v47 = vcombine.low %v2272_v44, %v2273_v45 }
  0x47   : > { %2442 = vmatpush3.bf16.msra.mxu1 %v2702_v7  ;;  %2443 = vmatprep.mubr.msk.bf16.mxu1 %vm2617_vm0, %v2616_v2  ;;  %v1623_v43 = vor.u32 %v1622_v40, %v1618_v39 }
  0x48   : > { %2453 = vmatprep.subr.bf16.mxu1 %v2616_v2  ;;  %v1842_v53 = vshrl.u32 %v2276_v47, 16 }
  0x4b   : > { %2426 = vmatmul.mubr.msk.bf16.vlgmr.msra.gmra.mxu0 %vm262_vm1, %v951_v60 }
  0x4c   : > { %2436 = vmatpush3.bf16.msra.mxu0 %v2713_v14  ;;  %2437 = vmatprep.mubr.msk.bf16.mxu0 %vm2617_vm0, %v2616_v2 }
  0x4d   : > { %2447 = vmatprep.subr.bf16.mxu0 %v2616_v2 }
  0x4e   : > { %2444 = vmatmul.mubr.msk.bf16.vlgmr.msra.gmra.mxu1 %vm262_vm1, %v1093_v63 }
  0x4f   : > { %2454 = vmatpush3.bf16.msra.mxu1 %v2680_v1  ;;  %2455 = vmatprep.mubr.msk.bf16.mxu1 %vm2617_vm0, %v2616_v2 }
  0x50   : > { %2465 = vmatprep.subr.bf16.mxu1 %v2616_v2 }
  0x53   : > { %2438 = vmatmul.mubr.msk.bf16.vlgmr.msra.gmra.mxu0 %vm262_vm1, %v2230_v51  ;;  %v1844_v51 = vshll.u32 %v2276_v47, 16 }
  0x54   : > { %2448 = vmatpush3.bf16.msra.mxu0 %v2687_v3  ;;  %2449 = vmatprep.mubr.msk.bf16.mxu0 %vm2617_vm0, %v2616_v2 }
  0x55   : > { %2459 = vmatprep.subr.bf16.mxu0 %v2616_v2  ;;  %v1846_v54 = vrot.slane %v1844_v51, 1 }
  0x56   : > { %2456 = vmatmul.mubr.msk.bf16.vlgmr.msra.gmra.mxu1 %vm262_vm1, %v2239_v61 }
  0x57   : > { %2466 = vmatpush3.bf16.msra.mxu1 %v2702_v7  ;;  %2467 = vmatprep.mubr.msk.bf16.mxu1 %vm2617_vm0, %v2616_v2  ;;  %v1847_v56 = vor.u32 %v1846_v54, %v1842_v53 }
  0x58   : > { %2477 = vmatprep.subr.bf16.mxu1 %v2616_v2 }
  0x5b   : > { %2450 = vmatmul.mubr.msk.bf16.vlgmr.msra.gmra.mxu0 %vm262_vm1, %v1175_v15 }
  0x5c   : > { %2460 = vmatpush3.bf16.msra.mxu0 %v2713_v14  ;;  %2461 = vmatprep.mubr.msk.bf16.mxu0 %vm2617_vm0, %v2616_v2 }
  0x5d   : > { %2471 = vmatprep.subr.bf16.mxu0 %v2616_v2 }
  0x5e   : > { %2468 = vmatmul.mubr.msk.bf16.vlgmr.msra.gmra.mxu1 %vm262_vm1, %v1317_v18 }
  0x5f   : > { %2478 = vmatpush3.bf16.msra.mxu1 %v2680_v1  ;;  %2479 = vmatprep.mubr.msk.bf16.mxu1 %vm2617_vm0, %v2616_v2 }
  0x60   : > { %2489 = vmatprep.subr.bf16.mxu1 %v2616_v2 }
  0x63   : > { %2462 = vmatmul.mubr.msk.bf16.vlgmr.msra.gmra.mxu0 %vm262_vm1, %v2241_v4 }
  0x64   : > { %2472 = vmatpush3.bf16.msra.mxu0 %v2687_v3  ;;  %2473 = vmatprep.mubr.msk.bf16.mxu0 %vm2617_vm0, %v2616_v2 }
  0x65   : > { %2483 = vmatprep.subr.bf16.mxu0 %v2616_v2 }
  0x66   : > { %2480 = vmatmul.mubr.msk.bf16.vlgmr.msra.gmra.mxu1 %vm262_vm1, %v2250_v16 }
  0x67   : > { %2490 = vmatpush3.bf16.msra.mxu1 %v2702_v7  ;;  %2491 = vmatprep.mubr.msk.bf16.mxu1 %vm2617_vm0, %v2616_v2 }
  0x68   : > { %2501 = vmatprep.subr.bf16.mxu1 %v2616_v2 }
  0x6b   : > { %2474 = vmatmul.mubr.msk.bf16.vlgmr.msra.gmra.mxu0 %vm262_vm1, %v1399_v29 }
  0x6c   : > { %2484 = vmatpush3.bf16.msra.mxu0 %v2713_v14  ;;  %2485 = vmatprep.mubr.msk.bf16.mxu0 %vm2617_vm0, %v2616_v2 }
  0x6d   : > { %2495 = vmatprep.subr.bf16.mxu0 %v2616_v2 }
  0x6e   : > { %2492 = vmatmul.mubr.msk.bf16.vlgmr.msra.gmra.mxu1 %vm262_vm1, %v1541_v32 }
  0x6f   : > { %2502 = vmatpush3.bf16.msra.mxu1 %v2680_v1  ;;  %2503 = vmatprep.mubr.msk.bf16.mxu1 %vm2617_vm0, %v2616_v2 }
  0x70   : > { %2513 = vmatprep.subr.bf16.mxu1 %v2616_v2 }
  0x73   : > { %2486 = vmatmul.mubr.msk.bf16.vlgmr.msra.gmra.mxu0 %vm262_vm1, %v2252_v20 }
  0x74   : > { %2496 = vmatpush3.bf16.msra.mxu0 %v2687_v3  ;;  %2497 = vmatprep.mubr.msk.bf16.mxu0 %vm2617_vm0, %v2616_v2 }
  0x75   : > { %2507 = vmatprep.subr.bf16.mxu0 %v2616_v2 }
  0x76   : > { %2504 = vmatmul.mubr.msk.bf16.vlgmr.msra.gmra.mxu1 %vm262_vm1, %v2261_v30 }
  0x77   : > { %2514 = vmatpush3.bf16.msra.mxu1 %v2702_v7  ;;  %2515 = vmatprep.mubr.msk.bf16.mxu1 %vm2617_vm0, %v2616_v2 }
  0x78   : > { %2525 = vmatprep.subr.bf16.mxu1 %v2616_v2 }
  0x7b   : > { %2498 = vmatmul.mubr.msk.bf16.vlgmr.msra.gmra.mxu0 %vm262_vm1, %v1623_v43 }
  0x7c   : > { %2508 = vmatpush3.bf16.msra.mxu0 %v2713_v14  ;;  %2509 = vmatprep.mubr.msk.bf16.mxu0 %vm2617_vm0, %v2616_v2 }
  0x7d   : > { %2519 = vmatprep.subr.bf16.mxu0 %v2616_v2 }
  0x7e   : > { %2516 = vmatmul.mubr.msk.bf16.vlgmr.msra.gmra.mxu1 %vm262_vm1, %v1765_v46 }
  0x7f   : > { %2526 = vmatpush3.bf16.msra.mxu1 %v2680_v1  ;;  %2527 = vmatprep.mubr.msk.bf16.mxu1 %vm2617_vm0, %v2616_v2  ;;  %v1984_v1 = vshrl.u32 %v2280_v50, 16 }
  0x80   : > { %2537 = vmatprep.subr.bf16.mxu1 %v2616_v2 }
  0x81   : > { %v1989_v57 = vor.u32 %v1988_v55, %v1984_v1 }
  0x83   : > { %2510 = vmatmul.mubr.msk.bf16.vlgmr.msra.gmra.mxu0 %vm262_vm1, %v2263_v34 }
  0x84   : > { %2520 = vmatpush3.bf16.msra.mxu0 %v2687_v3  ;;  %2521 = vmatprep.mubr.msk.bf16.mxu0 %vm2617_vm0, %v2616_v2 }
  0x85   : > { %2531 = vmatprep.subr.bf16.mxu0 %v2616_v2 }
  0x86   : > { %2528 = vmatmul.mubr.msk.bf16.vlgmr.msra.gmra.mxu1 %vm262_vm1, %v2272_v44 }
  0x87   : > { %2538 = vmatpush3.bf16.msra.mxu1 %v2702_v7  ;;  %2539 = vmatprep.mubr.msk.bf16.mxu1 %vm2617_vm0, %v2616_v2 }
  0x8b   : > { %2522 = vmatmul.mubr.msk.bf16.vlgmr.msra.gmra.mxu0 %vm262_vm1, %v1847_v56 }
  0x8c   : > { %2532 = vmatpush3.bf16.msra.mxu0 %v2713_v14  ;;  %2533 = vmatprep.mubr.msk.bf16.mxu0 %vm2617_vm0, %v2616_v2 }
  0x8e   : > { %2540 = vmatmul.mubr.msk.bf16.vlgmr.msra.gmra.mxu1 %vm262_vm1, %v1989_v57 }
  0x93   : > { %2534 = vmatmul.mubr.msk.bf16.vlgmr.msra.gmra.mxu0 %vm262_vm1, %v2274_v48 }
  0xd6   : > { %v349_v3 = vpop.f32.mrf.mxu1 }
  0xd8   : > { %v2361_v58 = vpop.f32.mrf.mxu1 }
  0xda   : > { %v352_v59 = vpop.f32.mrf.mxu1 }
  0xdb   : > { %v300_v60 = vpop.f32.mrf.mxu0 }
  0xdc   : > { %v2362_v7 = vpop.f32.mrf.mxu1  ;;  %v350_v5 = vadd.f32 %v349_v3, %v300_v60 }
  0xdd   : > { %v2355_v61 = vpop.f32.mrf.mxu0 }
  0xde   : > { %v460_v62 = vpop.f32.mrf.mxu1 }
  0xdf   : > { %v303_v63 = vpop.f32.mrf.mxu0 }
  0xe0   : > { %v2373_v0 = vpop.f32.mrf.mxu1 }
  0xe1   : > { %v2356_v4 = vpop.f32.mrf.mxu0 }
  0xe2   : > { %v463_v14 = vpop.f32.mrf.mxu1 }
  0xe3   : > { %v398_v6 = vpop.f32.mrf.mxu0 }
  0xe4   : > { %v404_v8 = vadd.f32 %v398_v6, %v350_v5  ;;  %v2374_v2 = vpop.f32.mrf.mxu1 }
  0xe5   : > { %v2367_v9 = vpop.f32.mrf.mxu0 }
  0xe6   : > { %v466_v10 = vadd.f32 %v460_v62, %v404_v8  ;;  %v584_v11 = vpop.f32.mrf.mxu1 }
  0xe7   : > { %v401_v12 = vpop.f32.mrf.mxu0 }
  0xe8   : > { %v482_v13 = vpack.c.bf16 %v466_v10, %v466_v10  ;;  %v2385_v15 = vpop.f32.mrf.mxu1  ;;  %v474_v19 = vmul.f32 %v466_v10, %v466_v10  ;;  %v467_v22 = vrot.slane %v466_v10, 4 }
  0xe9   : > { %v2368_v16 = vpop.f32.mrf.mxu0 }
  0xea   : > { %483 = vst [vmem:[%s2664_s23] sm:$0xf] %v482_v13  ;;  %v587_v17 = vpop.f32.mrf.mxu1  ;;  %v475_v25 = vrot.slane %v474_v19, 4  ;;  %v468_v28 = vadd.f32 %v467_v22, %v466_v10 }
  0xeb   : > { %v541_v18 = vpop.f32.mrf.mxu0 }
  0xec   : > { %v2386_v20 = vpop.f32.mrf.mxu1  ;;  %v585_v29 = vadd.f32 %v584_v11, %v541_v18  ;;  %v476_v32 = vadd.f32 %v475_v25, %v474_v19  ;;  %v469_v36 = vrot.slane %v468_v28, 2 }
  0xed   : > { %v2379_v21 = vpop.f32.mrf.mxu0 }
  0xee   : > { %v683_v23 = vpop.f32.mrf.mxu1  ;;  %v477_v40 = vrot.slane %v476_v32, 2  ;;  %v470_v46 = vadd.f32 %v469_v36, %v468_v28 }
  0xef   : > { %v544_v24 = vpop.f32.mrf.mxu0 }
  0xf0   : > { %v2397_v26 = vpop.f32.mrf.mxu1  ;;  %v478_v51 = vadd.f32 %v477_v40, %v476_v32  ;;  %v471_v55 = vrot.slane %v470_v46, 1 }
  0xf1   : > { %v2380_v27 = vpop.f32.mrf.mxu0 }
  0xf2   : > { %v686_v30 = vpop.f32.mrf.mxu1  ;;  %v479_v59 = vrot.slane %v478_v51, 1  ;;  %v472_v63 = vadd.f32 %v471_v55, %v470_v46 }
  0xf3   : > { %v627_v31 = vpop.f32.mrf.mxu0 }
  0xf4   : > { %v633_v33 = vadd.f32 %v627_v31, %v585_v29  ;;  %v2398_v34 = vpop.f32.mrf.mxu1  ;;  %v480_v8 = vadd.f32 %v479_v59, %v478_v51 }
  0xf5   : > { %v2391_v35 = vpop.f32.mrf.mxu0 }
  0xf6   : > { %v689_v37 = vadd.f32 %v683_v23, %v633_v33  ;;  %v808_v38 = vpop.f32.mrf.mxu1 }
  0xf7   : > { %v630_v39 = vpop.f32.mrf.mxu0 }
  0xf8   : > { %v690_v41 = vrot.slane %v689_v37, 4  ;;  %v697_v42 = vmul.f32 %v689_v37, %v689_v37  ;;  %v705_v43 = vpack.c.bf16 %v689_v37, %v689_v37  ;;  %v2409_v44 = vpop.f32.mrf.mxu1 }
  0xf9   : > { %v2392_v45 = vpop.f32.mrf.mxu0 }
  0xfa   : > { %v691_v47 = vadd.f32 %v690_v41, %v689_v37  ;;  %v698_v48 = vrot.slane %v697_v42, 4  ;;  %2216 = vst [vmem:[%s2664_s23 + $0x4] sm:$0xf] %v705_v43  ;;  %v811_v49 = vpop.f32.mrf.mxu1 }
  0xfb   : > { %v765_v50 = vpop.f32.mrf.mxu0 }
  0xfc   : > { %v692_v52 = vrot.slane %v691_v47, 2  ;;  %v699_v53 = vadd.f32 %v698_v48, %v697_v42  ;;  %v2410_v54 = vpop.f32.mrf.mxu1  ;;  %v809_v5 = vadd.f32 %v808_v38, %v765_v50 }
  0xfd   : > { %v2403_v1 = vpop.f32.mrf.mxu0 }
  0xfe   : > { %v693_v56 = vadd.f32 %v692_v52, %v691_v47  ;;  %v700_v57 = vrot.slane %v699_v53, 2  ;;  %v907_v3 = vpop.f32.mrf.mxu1 }
  0xff   : > { %v768_v58 = vpop.f32.mrf.mxu0 }
 0x100   : > { %v694_v60 = vrot.slane %v693_v56, 1  ;;  %v701_v7 = vadd.f32 %v700_v57, %v699_v53  ;;  %v2421_v61 = vpop.f32.mrf.mxu1 }
 0x101   : > { %v2404_v62 = vpop.f32.mrf.mxu0 }
 0x102   : > { %v695_v0 = vadd.f32 %v694_v60, %v693_v56  ;;  %v702_v4 = vrot.slane %v701_v7, 1  ;;  %v910_v14 = vpop.f32.mrf.mxu1 }
 0x103   : > { %v851_v6 = vpop.f32.mrf.mxu0 }
 0x104   : > { %v696_v2 = vadd.f32 %v695_v0, %v472_v63  ;;  %v703_v9 = vadd.f32 %v702_v4, %v701_v7  ;;  %v857_v10 = vadd.f32 %v851_v6, %v809_v5  ;;  %v2422_v11 = vpop.f32.mrf.mxu1 }
 0x105   : > { %v2415_v12 = vpop.f32.mrf.mxu0 }
 0x106   : > { %v704_v13 = vadd.f32 %v703_v9, %v480_v8  ;;  %v913_v15 = vadd.f32 %v907_v3, %v857_v10  ;;  %v1032_v16 = vpop.f32.mrf.mxu1 }
 0x107   : > { %v854_v17 = vpop.f32.mrf.mxu0 }
 0x108   : > { %v914_v18 = vrot.slane %v913_v15, 4  ;;  %v921_v19 = vmul.f32 %v913_v15, %v913_v15  ;;  %v929_v20 = vpack.c.bf16 %v913_v15, %v913_v15  ;;  %v2433_v21 = vpop.f32.mrf.mxu1 }
 0x109   : > { %v2416_v22 = vpop.f32.mrf.mxu0 }
 0x10a   : > { %v915_v23 = vadd.f32 %v914_v18, %v913_v15  ;;  %v922_v24 = vrot.slane %v921_v19, 4  ;;  %2227 = vst [vmem:[%s2664_s23 + $0x8] sm:$0xf] %v929_v20  ;;  %v1035_v25 = vpop.f32.mrf.mxu1 }
 0x10b   : > { %v989_v26 = vpop.f32.mrf.mxu0 }
 0x10c   : > { %v916_v27 = vrot.slane %v915_v23, 2  ;;  %v923_v28 = vadd.f32 %v922_v24, %v921_v19  ;;  %v2434_v29 = vpop.f32.mrf.mxu1  ;;  %v1033_v41 = vadd.f32 %v1032_v16, %v989_v26 }
 0x10d   : > { %v2427_v30 = vpop.f32.mrf.mxu0 }
 0x10e   : > { %v917_v31 = vadd.f32 %v916_v27, %v915_v23  ;;  %v924_v32 = vrot.slane %v923_v28, 2  ;;  %v1131_v33 = vpop.f32.mrf.mxu1 }
 0x10f   : > { %v992_v34 = vpop.f32.mrf.mxu0 }
 0x110   : > { %v918_v35 = vrot.slane %v917_v31, 1  ;;  %v925_v36 = vadd.f32 %v924_v32, %v923_v28  ;;  %v2445_v37 = vpop.f32.mrf.mxu1 }
 0x111   : > { %v2428_v38 = vpop.f32.mrf.mxu0 }
 0x112   : > { %v919_v39 = vadd.f32 %v918_v35, %v917_v31  ;;  %v926_v40 = vrot.slane %v925_v36, 1  ;;  %v1134_v42 = vpop.f32.mrf.mxu1 }
 0x113   : > { %v1075_v43 = vpop.f32.mrf.mxu0 }
 0x114   : > { %v2892_v44 = vadd.f32 %v919_v39, %v696_v2  ;;  %v927_v45 = vadd.f32 %v926_v40, %v925_v36  ;;  %v1081_v46 = vadd.f32 %v1075_v43, %v1033_v41  ;;  %v2446_v47 = vpop.f32.mrf.mxu1 }
 0x115   : > { %v2439_v48 = vpop.f32.mrf.mxu0 }
 0x116   : > { %v2894_v49 = vadd.f32 %v927_v45, %v704_v13  ;;  %v2896_v50 = vadd.f32 %v1131_v33, %v1081_v46  ;;  %v1256_v51 = vpop.f32.mrf.mxu1 }
 0x117   : > { %v1078_v52 = vpop.f32.mrf.mxu0 }
 0x118   : > { %v1153_v53 = vpack.c.bf16 %v2896_v50, %v2896_v50  ;;  %v2457_v54 = vpop.f32.mrf.mxu1  ;;  %v1145_v39 = vmul.f32 %v2896_v50, %v2896_v50  ;;  %v1138_v43 = vrot.slane %v2896_v50, 4 }
 0x119   : > { %v2440_v1 = vpop.f32.mrf.mxu0 }
 0x11a   : > { %2238 = vst [vmem:[%s2664_s23 + $0xc] sm:$0xf] %v1153_v53  ;;  %v1259_v55 = vpop.f32.mrf.mxu1 }
 0x11b   : > { %v1213_v56 = vpop.f32.mrf.mxu0 }
 0x11c   : > { %v2458_v57 = vpop.f32.mrf.mxu1  ;;  %v1257_v61 = vadd.f32 %v1256_v51, %v1213_v56  ;;  %v1146_v51 = vrot.slane %v1145_v39, 4  ;;  %v1139_v56 = vadd.f32 %v1138_v43, %v2896_v50 }
 0x11d   : > { %v2451_v3 = vpop.f32.mrf.mxu0 }
 0x11e   : > { %v1355_v58 = vpop.f32.mrf.mxu1 }
 0x11f   : > { %v1216_v59 = vpop.f32.mrf.mxu0 }
 0x120   : > { %v2469_v60 = vpop.f32.mrf.mxu1 }
 0x121   : > { %v2452_v7 = vpop.f32.mrf.mxu0 }
 0x122   : > { %v1358_v62 = vpop.f32.mrf.mxu1 }
 0x123   : > { %v1299_v63 = vpop.f32.mrf.mxu0 }
 0x124   : > { %v1305_v0 = vadd.f32 %v1299_v63, %v1257_v61  ;;  %v2470_v4 = vpop.f32.mrf.mxu1  ;;  %v1147_v61 = vadd.f32 %v1146_v51, %v1145_v39 }
 0x125   : > { %v2463_v5 = vpop.f32.mrf.mxu0 }
 0x126   : > { %v1361_v14 = vadd.f32 %v1355_v58, %v1305_v0  ;;  %v1480_v6 = vpop.f32.mrf.mxu1  ;;  %v1148_v50 = vrot.slane %v1147_v61, 2 }
 0x127   : > { %v1302_v8 = vpop.f32.mrf.mxu0 }
 0x128   : > { %v1377_v2 = vpack.c.bf16 %v1361_v14, %v1361_v14  ;;  %v2481_v9 = vpop.f32.mrf.mxu1  ;;  %v1369_v45 = vmul.f32 %v1361_v14, %v1361_v14  ;;  %v1362_v52 = vrot.slane %v1361_v14, 4 }
 0x129   : > { %v2464_v10 = vpop.f32.mrf.mxu0 }
 0x12a   : > { %2249 = vst [vmem:[%s2664_s23 + $0x10] sm:$0xf] %v1377_v2  ;;  %v1483_v11 = vpop.f32.mrf.mxu1  ;;  %v1370_v57 = vrot.slane %v1369_v45, 4  ;;  %v1363_v62 = vadd.f32 %v1362_v52, %v1361_v14 }
 0x12b   : > { %v1437_v12 = vpop.f32.mrf.mxu0 }
 0x12c   : > { %v2482_v13 = vpop.f32.mrf.mxu1  ;;  %v1481_v20 = vadd.f32 %v1480_v6, %v1437_v12  ;;  %v1140_v6 = vrot.slane %v1139_v56, 2  ;;  %v1371_v8 = vadd.f32 %v1370_v57, %v1369_v45  ;;  %v1364_v12 = vrot.slane %v1363_v62, 2 }
 0x12d   : > { %v2475_v15 = vpop.f32.mrf.mxu0 }
 0x12e   : > { %v1579_v16 = vpop.f32.mrf.mxu1 }
 0x12f   : > { %v1440_v17 = vpop.f32.mrf.mxu0 }
 0x130   : > { %v2493_v18 = vpop.f32.mrf.mxu1 }
 0x131   : > { %v2476_v19 = vpop.f32.mrf.mxu0  ;;  %v1141_v18 = vadd.f32 %v1140_v6, %v1139_v56 }
 0x132   : > { %v1582_v21 = vpop.f32.mrf.mxu1  ;;  %v1372_v19 = vrot.slane %v1371_v8, 2 }
 0x133   : > { %v1523_v22 = vpop.f32.mrf.mxu0 }
 0x134   : > { %v1529_v23 = vadd.f32 %v1523_v22, %v1481_v20  ;;  %v2494_v24 = vpop.f32.mrf.mxu1 }
 0x135   : > { %v2487_v25 = vpop.f32.mrf.mxu0  ;;  %v1365_v24 = vadd.f32 %v1364_v12, %v1363_v62 }
 0x136   : > { %v1585_v26 = vadd.f32 %v1579_v16, %v1529_v23  ;;  %v1704_v27 = vpop.f32.mrf.mxu1  ;;  %v1149_v23 = vadd.f32 %v1148_v50, %v1147_v61 }
 0x137   : > { %v1526_v28 = vpop.f32.mrf.mxu0 }
 0x138   : > { %v1601_v29 = vpack.c.bf16 %v1585_v26, %v1585_v26  ;;  %v2505_v30 = vpop.f32.mrf.mxu1  ;;  %v1593_v54 = vmul.f32 %v1585_v26, %v1585_v26  ;;  %v1586_v3 = vrot.slane %v1585_v26, 4 }
 0x139   : > { %v2488_v31 = vpop.f32.mrf.mxu0  ;;  %v1142_v30 = vrot.slane %v1141_v18, 1 }
 0x13a   : > { %2260 = vst [vmem:[%s2664_s23 + $0x14] sm:$0xf] %v1601_v29  ;;  %v1707_v32 = vpop.f32.mrf.mxu1  ;;  %v1594_v0 = vrot.slane %v1593_v54, 4  ;;  %v1587_v2 = vadd.f32 %v1586_v3, %v1585_v26  ;;  %v1373_v31 = vadd.f32 %v1372_v19, %v1371_v8 }
 0x13b   : > { %v1661_v33 = vpop.f32.mrf.mxu0  ;;  %v1143_v43 = vadd.f32 %v1142_v30, %v1141_v18 }
 0x13c   : > { %v2506_v34 = vpop.f32.mrf.mxu1  ;;  %v1705_v41 = vadd.f32 %v1704_v27, %v1661_v33  ;;  %v1595_v15 = vadd.f32 %v1594_v0, %v1593_v54  ;;  %v1588_v14 = vrot.slane %v1587_v2, 2  ;;  %v1374_v45 = vrot.slane %v1373_v31, 1 }
 0x13d   : > { %v2499_v35 = vpop.f32.mrf.mxu0 }
 0x13e   : > { %v1803_v36 = vpop.f32.mrf.mxu1  ;;  %v1596_v27 = vrot.slane %v1595_v15, 2  ;;  %v1589_v32 = vadd.f32 %v1588_v14, %v1587_v2  ;;  %v2055_v14 = vld [vmem:[%s2936_s4] sm:$0x1] }
 0x13f   : > { %v1664_v37 = vpop.f32.mrf.mxu0 }
 0x140   : > { %v2517_v38 = vpop.f32.mrf.mxu1  ;;  %v1150_v37 = vrot.slane %v1149_v23, 1 }
 0x141   : > { %v2500_v40 = vpop.f32.mrf.mxu0  ;;  %v1366_v38 = vrot.slane %v1365_v24, 1 }
 0x142   : > { %v1806_v42 = vpop.f32.mrf.mxu1  ;;  %v1597_v40 = vadd.f32 %v1596_v27, %v1595_v15  ;;  %v1151_v54 = vadd.f32 %v1150_v37, %v1149_v23 }
 0x143   : > { %v1747_v46 = vpop.f32.mrf.mxu0 }
 0x144   : > { %v1753_v47 = vadd.f32 %v1747_v46, %v1705_v41  ;;  %v2518_v48 = vpop.f32.mrf.mxu1  ;;  %v1590_v46 = vrot.slane %v1589_v32, 1  ;;  %v1598_v56 = vrot.slane %v1597_v40, 1  ;;  %v1152_v0 = vadd.f32 %v1151_v54, %v2894_v49 }
 0x145   : > { %v2511_v53 = vpop.f32.mrf.mxu0 }
 0x146   : > { %v1809_v1 = vadd.f32 %v1803_v36, %v1753_v47  ;;  %v1928_v55 = vpop.f32.mrf.mxu1 }
 0x147   : > { %v1750_v58 = vpop.f32.mrf.mxu0 }
 0x148   : > { %v1817_v59 = vmul.f32 %v1809_v1, %v1809_v1  ;;  %v1825_v60 = vpack.c.bf16 %v1809_v1, %v1809_v1  ;;  %v2529_v7 = vpop.f32.mrf.mxu1  ;;  %v1810_v4 = vrot.slane %v1809_v1, 4 }
 0x149   : > { %v2512_v63 = vpop.f32.mrf.mxu0  ;;  %v1591_v7 = vadd.f32 %v1590_v46, %v1589_v32 }
 0x14a   : > { %2271 = vst [vmem:[%s2664_s23 + $0x18] sm:$0xf] %v1825_v60  ;;  %v1931_v5 = vpop.f32.mrf.mxu1  ;;  %v1818_v10 = vrot.slane %v1817_v59, 4  ;;  %v1811_v16 = vadd.f32 %v1810_v4, %v1809_v1  ;;  %v1367_v1 = vadd.f32 %v1366_v38, %v1365_v24  ;;  %v1375_v60 = vadd.f32 %v1374_v45, %v1373_v31 }
 0x14b   : > { %v1885_v9 = vpop.f32.mrf.mxu0  ;;  %v1599_v5 = vadd.f32 %v1598_v56, %v1597_v40 }
 0x14c   : > { %v2530_v11 = vpop.f32.mrf.mxu1  ;;  %v1819_v21 = vadd.f32 %v1818_v10, %v1817_v59  ;;  %v1812_v26 = vrot.slane %v1811_v16, 2  ;;  %v1929_v28 = vadd.f32 %v1928_v55, %v1885_v9  ;;  %v1144_v59 = vadd.f32 %v1143_v43, %v2892_v44 }
 0x14d   : > { %v2523_v13 = vpop.f32.mrf.mxu0  ;;  %v1376_v9 = vadd.f32 %v1375_v60, %v1152_v0 }
 0x14e   : > { %v2027_v17 = vpop.f32.mrf.mxu1  ;;  %v1820_v34 = vrot.slane %v1819_v21, 2  ;;  %v1813_v41 = vadd.f32 %v1812_v26, %v1811_v16  ;;  %v1368_v4 = vadd.f32 %v1367_v1, %v1144_v59 }
 0x14f   : > { %v1888_v20 = vpop.f32.mrf.mxu0  ;;  %v1600_v13 = vadd.f32 %v1599_v5, %v1376_v9 }
 0x150   : > { %v2541_v22 = vpop.f32.mrf.mxu1  ;;  %v1821_v48 = vadd.f32 %v1820_v34, %v1819_v21  ;;  %v1814_v57 = vrot.slane %v1813_v41, 1  ;;  %v1592_v10 = vadd.f32 %v1591_v7, %v1368_v4 }
 0x151   : > { %v2524_v25 = vpop.f32.mrf.mxu0 }
 0x152   : > { %v2030_v29 = vpop.f32.mrf.mxu1  ;;  %v1822_v61 = vrot.slane %v1821_v48, 1  ;;  %v1815_v6 = vadd.f32 %v1814_v57, %v1813_v41 }
 0x153   : > { %v1971_v33 = vpop.f32.mrf.mxu0 }
 0x154   : > { %v1977_v35 = vadd.f32 %v1971_v33, %v1929_v28  ;;  %v2542_v36 = vpop.f32.mrf.mxu1  ;;  %v1823_v11 = vadd.f32 %v1822_v61, %v1821_v48  ;;  %v1816_v15 = vadd.f32 %v1815_v6, %v1592_v10 }
 0x155   : > { %v2535_v39 = vpop.f32.mrf.mxu0 }
 0x156   : > { %v2033_v42 = vadd.f32 %v2027_v17, %v1977_v35  ;;  %v2052_v17 = vld [vmem:[%s2935_s3] sm:$0x1]  ;;  %v1824_v18 = vadd.f32 %v1823_v11, %v1600_v13 }
 0x157   : > { %v1974_v47 = vpop.f32.mrf.mxu0 }
 0x158   : > { %v2034_v51 = vrot.slane %v2033_v42, 4  ;;  %v2041_v52 = vmul.f32 %v2033_v42, %v2033_v42  ;;  %v2049_v53 = vpack.c.bf16 %v2033_v42, %v2033_v42 }
 0x159   : > { %v2536_v55 = vpop.f32.mrf.mxu0 }
 0x15a   : > { %v2035_v3 = vadd.f32 %v2034_v51, %v2033_v42  ;;  %v2042_v58 = vrot.slane %v2041_v52, 4  ;;  %2282 = vst [vmem:[%s2664_s23 + $0x1c] sm:$0xf] %v2049_v53 }
 0x15c   : > { %v2036_v62 = vrot.slane %v2035_v3, 2  ;;  %v2043_v63 = vadd.f32 %v2042_v58, %v2041_v52 }
 0x15e   : > { %v2037_v8 = vadd.f32 %v2036_v62, %v2035_v3  ;;  %v2044_v2 = vrot.slane %v2043_v63, 2 }
 0x160   : > { %v2038_v50 = vrot.slane %v2037_v8, 1  ;;  %v2045_v12 = vadd.f32 %v2044_v2, %v2043_v63 }
 0x162   : > { %v2039_v44 = vadd.f32 %v2038_v50, %v2037_v8  ;;  %v2046_v16 = vrot.slane %v2045_v12, 1 }
 0x164   : > { %v2040_v49 = vadd.f32 %v2039_v44, %v1816_v15  ;;  %v2047_v19 = vadd.f32 %v2046_v16, %v2045_v12 }
 0x166   : > { %v2048_v20 = vadd.f32 %v2047_v19, %v1824_v18  ;;  %v2053_v21 = vadd.f32 %v2052_v17, %v2040_v49 }
 0x168   : > { %2054 = vst [vmem:[%s2935_s3] sm:$0x1] %v2053_v21  ;;  %v2056_v22 = vadd.f32 %v2055_v14, %v2048_v20 }
 0x16a   : > { %2057 = vst [vmem:[%s2936_s4] sm:$0x1] %v2056_v22 }
 0x16b PF: > { %s15_s17 = sadd.s32 1, %s2613_s17   ;;  %s2937_s15 = smov %s2609_s16 }
 0x16c   : > { %p12_p6 = scmp.ge.s32.totalorder %s15_s17, 4   ;;  %s2938_s16 = smov %s2940_s18 }
 0x16e   :  { %14 = sbr.rel (!%p12_p6) target bundleno = 2 (0x2), region = 96 }

</bundles_post_ra>
